<compile_context>
chip_gen: v5e
topology: v5e:2x2
jax: 0.10.0
libtpu: 0.0.40
codegen_flags: <defaults>
</compile_context>

<pallas_src>
import functools
import math

import jax
import jax.numpy as jnp
from jax.experimental import pallas as pl
from jax.experimental.pallas import tpu as pltpu

_VMEM_LIMIT = 48 * 1024 * 1024  # safe on all of v5e / v6e / v7x


# ------------------------------ helpers -------------------------------

def _pick_tile(dim, target, align):
    """Largest align-multiple tile <= target dividing dim, else the full dim (always legal)."""
    if dim <= target:
        return dim
    for t in range(target, align - 1, -1):
        if dim % t == 0 and t % align == 0:
            return t
    return dim


def _head_group(num_heads, head_dim):
    """Smallest head-group size G dividing num_heads with G*head_dim a 128 multiple."""
    for g in range(1, num_heads + 1):
        if num_heads % g == 0 and (g * head_dim) % 128 == 0:
            return g
    return num_heads


def _erf(x):
    # Abramowitz & Stegun 7.1.26 (|err| <= 1.5e-7): exact-GELU without an erf primitive.
    a1, a2, a3, a4, a5 = 0.254829592, -0.284496736, 1.421413741, -1.453152027, 1.061405429
    p = 0.3275911
    sign = jnp.where(x >= 0.0, 1.0, -1.0)
    ax = jnp.abs(x)
    t = 1.0 / (1.0 + p * ax)
    poly = ((((a5 * t + a4) * t + a3) * t + a2) * t + a1) * t
    return sign * (1.0 - poly * jnp.exp(-ax * ax))


def _gelu(x):
    return 0.5 * x * (1.0 + _erf(x * (1.0 / math.sqrt(2.0))))


# ------------------------------ dense (weight-resident) --------------------------------

def _dense_kernel(x_ref, w_ref, b_ref, o_ref, *, activation):
    y = jnp.dot(x_ref[...], w_ref[...], preferred_element_type=jnp.float32) + b_ref[...]
    if activation == "gelu":
        y = _gelu(y)
    o_ref[...] = y.astype(o_ref.dtype)


def dense(x, w, b, activation="none", out_dtype=jnp.bfloat16, tm=512):
    """o = act(x @ w + b); weight-resident (full K, N in VMEM), grid over M only."""
    M, K = x.shape
    _, N = w.shape
    tm = _pick_tile(M, tm, 8)
    return pl.pallas_call(
        functools.partial(_dense_kernel, activation=activation),
        out_shape=jax.ShapeDtypeStruct((M, N), out_dtype),
        grid=(M // tm,),
        in_specs=[
            pl.BlockSpec((tm, K), lambda i: (i, 0)),
            pl.BlockSpec((K, N), lambda i: (0, 0)),
            pl.BlockSpec((1, N), lambda i: (0, 0)),
        ],
        out_specs=pl.BlockSpec((tm, N), lambda i: (i, 0)),
        compiler_params=pltpu.CompilerParams(
            dimension_semantics=("parallel",), vmem_limit_bytes=_VMEM_LIMIT),
        cost_estimate=pl.CostEstimate(
            flops=2 * M * N * K,
            transcendentals=M * N if activation == "gelu" else 0,
            bytes_accessed=(M * K + K * N + M * N) * 2),
    )(x, w, b.reshape(1, N).astype(jnp.float32))


# ---------------------- dense + bias + residual + layernorm ----------------------------

def _dense_res_ln_kernel(x_ref, w_ref, b_ref, res_ref, g_ref, beta_ref, o_ref, *, eps):
    y = (jnp.dot(x_ref[...], w_ref[...], preferred_element_type=jnp.float32)
         + b_ref[...] + res_ref[...].astype(jnp.float32))
    mean = jnp.mean(y, axis=-1, keepdims=True)
    d = y - mean
    var = jnp.mean(d * d, axis=-1, keepdims=True)
    inv = jax.lax.rsqrt(var + eps)
    o_ref[...] = ((d * inv) * g_ref[...] + beta_ref[...]).astype(o_ref.dtype)


def dense_residual_layernorm(x, w, b, res, g, beta, eps=1e-12,
                             out_dtype=jnp.bfloat16, tm=512):
    """o = LayerNorm(res + x @ w + b); weight-resident, single parallel M axis."""
    M, K = x.shape
    _, N = w.shape
    tm = _pick_tile(M, tm, 8)
    return pl.pallas_call(
        functools.partial(_dense_res_ln_kernel, eps=eps),
        out_shape=jax.ShapeDtypeStruct((M, N), out_dtype),
        grid=(M // tm,),
        in_specs=[
            pl.BlockSpec((tm, K), lambda i: (i, 0)),
            pl.BlockSpec((K, N), lambda i: (0, 0)),
            pl.BlockSpec((1, N), lambda i: (0, 0)),
            pl.BlockSpec((tm, N), lambda i: (i, 0)),
            pl.BlockSpec((1, N), lambda i: (0, 0)),
            pl.BlockSpec((1, N), lambda i: (0, 0)),
        ],
        out_specs=pl.BlockSpec((tm, N), lambda i: (i, 0)),
        compiler_params=pltpu.CompilerParams(
            dimension_semantics=("parallel",), vmem_limit_bytes=_VMEM_LIMIT),
        cost_estimate=pl.CostEstimate(
            flops=2 * M * N * K, transcendentals=0,
            bytes_accessed=(M * K + K * N + 2 * M * N) * 2 + 3 * N * 4),
    )(x, w, b.reshape(1, N).astype(jnp.float32), res,
      g.reshape(1, N).astype(jnp.float32), beta.reshape(1, N).astype(jnp.float32))


# ----------------- fused FFN: up-proj + GELU + down-proj + residual + LN ----------------

def _ffn_kernel(x_ref, w1_ref, b1_ref, w2_ref, b2_ref, res_ref, g_ref, beta_ref,
                o_ref, acc_ref, *, eps):
    j = pl.program_id(1)

    @pl.when(j == 0)
    def _():
        acc_ref[...] = jnp.zeros_like(acc_ref)

    h = jnp.dot(x_ref[...], w1_ref[...], preferred_element_type=jnp.float32) + b1_ref[...]
    h = _gelu(h)
    acc_ref[...] += jnp.dot(h.astype(w2_ref.dtype), w2_ref[...],
                            preferred_element_type=jnp.float32)

    @pl.when(j == pl.num_programs(1) - 1)
    def _():
        y = acc_ref[...] + b2_ref[...] + res_ref[...].astype(jnp.float32)
        mean = jnp.mean(y, axis=-1, keepdims=True)
        d = y - mean
        var = jnp.mean(d * d, axis=-1, keepdims=True)
        inv = jax.lax.rsqrt(var + eps)
        o_ref[...] = ((d * inv) * g_ref[...] + beta_ref[...]).astype(o_ref.dtype)


def ffn_residual_layernorm(x, w1, b1, w2, b2, res, g, beta, eps=1e-12,
                           out_dtype=jnp.bfloat16, tm=512, ti=1536):
    """o = LayerNorm(res + GELU(x @ w1 + b1) @ w2 + b2), tiled over the intermediate dim;
    the (M, I) intermediate never leaves VMEM."""
    M, H = x.shape
    I = w1.shape[1]
    tm = _pick_tile(M, tm, 8)
    ti = _pick_tile(I, ti, 128)
    grid = (M // tm, I // ti)
    return pl.pallas_call(
        functools.partial(_ffn_kernel, eps=eps),
        out_shape=jax.ShapeDtypeStruct((M, H), out_dtype),
        grid=grid,
        in_specs=[
            pl.BlockSpec((tm, H), lambda i, j: (i, 0)),
            pl.BlockSpec((H, ti), lambda i, j: (0, j)),
            pl.BlockSpec((1, ti), lambda i, j: (0, j)),
            pl.BlockSpec((ti, H), lambda i, j: (j, 0)),
            pl.BlockSpec((1, H), lambda i, j: (0, 0)),
            pl.BlockSpec((tm, H), lambda i, j: (i, 0)),
            pl.BlockSpec((1, H), lambda i, j: (0, 0)),
            pl.BlockSpec((1, H), lambda i, j: (0, 0)),
        ],
        out_specs=pl.BlockSpec((tm, H), lambda i, j: (i, 0)),
        scratch_shapes=[pltpu.VMEM((tm, H), jnp.float32)],
        compiler_params=pltpu.CompilerParams(
            dimension_semantics=("parallel", "arbitrary"), vmem_limit_bytes=_VMEM_LIMIT),
        cost_estimate=pl.CostEstimate(
            flops=4 * M * I * H, transcendentals=M * I,
            bytes_accessed=(3 * M * H + 2 * H * I) * 2 + (I + 4 * H) * 4),
    )(x, w1, b1.reshape(1, I).astype(jnp.float32), w2,
      b2.reshape(1, H).astype(jnp.float32), res,
      g.reshape(1, H).astype(jnp.float32), beta.reshape(1, H).astype(jnp.float32))


# -------------------- embeddings: fused (tok + pos + type) + LayerNorm ------------------

def _emb_ln_kernel(tok_ref, pos_ref, typ_ref, g_ref, b_ref, o_ref, *, eps):
    x = tok_ref[...] + pos_ref[...] + typ_ref[...]          # (1, ts, H) f32
    mean = jnp.mean(x, axis=-1, keepdims=True)
    d = x - mean
    var = jnp.mean(d * d, axis=-1, keepdims=True)
    inv = jax.lax.rsqrt(var + eps)
    o_ref[...] = ((d * inv) * g_ref[...] + b_ref[...]).astype(o_ref.dtype)


def embed_layernorm(tok, pos, typ, g, b, eps=1e-12, out_dtype=jnp.bfloat16, ts=256):
    B, S, H = tok.shape
    ts = _pick_tile(S, ts, 8)
    return pl.pallas_call(
        functools.partial(_emb_ln_kernel, eps=eps),
        out_shape=jax.ShapeDtypeStruct((B, S, H), out_dtype),
        grid=(B, S // ts),
        in_specs=[
            pl.BlockSpec((1, ts, H), lambda bi, si: (bi, si, 0)),
            pl.BlockSpec((1, ts, H), lambda bi, si: (0, si, 0)),
            pl.BlockSpec((1, 1, H), lambda bi, si: (0, 0, 0)),
            pl.BlockSpec((1, 1, H), lambda bi, si: (0, 0, 0)),
            pl.BlockSpec((1, 1, H), lambda bi, si: (0, 0, 0)),
        ],
        out_specs=pl.BlockSpec((1, ts, H), lambda bi, si: (bi, si, 0)),
        compiler_params=pltpu.CompilerParams(dimension_semantics=("parallel", "parallel")),
    )(tok, pos, typ.reshape(1, 1, H), g.reshape(1, 1, H).astype(jnp.float32),
      b.reshape(1, 1, H).astype(jnp.float32))


# --------------------------------- attention ---------------------------------------------

def _attention_kernel(qkv_ref, mask_ref, o_ref, *, group_heads, head_dim, scale):
    """One (batch, head_group) per grid step. qkv uses the per-head interleaved layout
    [q_h | k_h | v_h] so a head group is one contiguous column slab; the output for the
    whole group is written as a single lane-dense (S, group_heads*head_dim) store."""
    qkv = qkv_ref[0]                       # (S, 3*G*d) bf16
    m = mask_ref[0]                        # (1, S)     f32 additive key mask
    parts = []
    for j in range(group_heads):
        base = j * 3 * head_dim
        q = qkv[:, base:base + head_dim]
        k = qkv[:, base + head_dim:base + 2 * head_dim]
        v = qkv[:, base + 2 * head_dim:base + 3 * head_dim]
        s = jax.lax.dot_general(q, k, (((1,), (1,)), ((), ())),
                                preferred_element_type=jnp.float32) * scale + m
        s = s - jnp.max(s, axis=-1, keepdims=True)
        p = jnp.exp(s)
        p = p * pl.reciprocal(jnp.sum(p, axis=-1, keepdims=True), approx=True)
        parts.append(jnp.dot(p.astype(qkv.dtype), v, preferred_element_type=jnp.float32))
    ctx = parts[0] if len(parts) == 1 else jnp.concatenate(parts, axis=-1)
    o_ref[0] = ctx.astype(o_ref.dtype)


def attention(qkv, mask_add, num_heads):
    # qkv: (B, S, 3H) bf16 in per-head [q|k|v] layout; mask_add: (B, 1, S) f32 additive mask
    B, S, H3 = qkv.shape
    H = H3 // 3
    head_dim = H // num_heads
    scale = 1.0 / math.sqrt(head_dim)
    G = _head_group(num_heads, head_dim)
    n_groups = num_heads // G
    gw = G * head_dim
    return pl.pallas_call(
        functools.partial(_attention_kernel, group_heads=G, head_dim=head_dim, scale=scale),
        out_shape=jax.ShapeDtypeStruct((B, S, H), qkv.dtype),
        grid=(B, n_groups),
        in_specs=[
            pl.BlockSpec((1, S, 3 * gw), lambda b, g: (b, 0, g)),
            pl.BlockSpec((1, 1, S), lambda b, g: (b, 0, 0)),
        ],
        out_specs=pl.BlockSpec((1, S, gw), lambda b, g: (b, 0, g)),
        compiler_params=pltpu.CompilerParams(
            dimension_semantics=("parallel", "parallel"), vmem_limit_bytes=_VMEM_LIMIT),
    )(qkv, mask_add)


# ------------------------------- model forward --------------------------------

def finbert_regressor_forward(params, input_ids, attention_mask, *, num_heads):
    B, S = input_ids.shape
    H = params["word_emb"].shape[1]

    # --- embeddings: gather stays in plain JAX; sum + LN fused in one kernel ---
    tok = jnp.take(params["word_emb"], input_ids, axis=0)          # (B, S, H) f32
    pos = params["pos_emb"][:S][None]                              # (1, S, H)
    # TODO(synk): token_type_ids assumed all-zero (single-segment inputs).
    typ = params["type_emb"][0]                                    # (H,)
    x = embed_layernorm(tok, pos, typ, params["emb_ln_g"], params["emb_ln_b"])
    x = x.reshape(B * S, H)                                        # (B*S, H) bf16

    # additive attention mask, one copy per batch element
    mask_add = ((1.0 - attention_mask.astype(jnp.float32)) * -10000.0)[:, None, :]  # (B,1,S)

    for layer in params["layers"]:
        # fused, per-head-interleaved Q|K|V projection (weights already bf16)
        qkv = dense(x, layer["w_qkv"], layer["b_qkv"])                        # (B*S, 3H)
        ctx = attention(qkv.reshape(B, S, 3 * H), mask_add, num_heads)        # (B, S, H)
        # attention output proj + bias + residual + layernorm, fused
        x = dense_residual_layernorm(ctx.reshape(B * S, H), layer["wo"], layer["bo"],
                                     x, layer["ln1_g"], layer["ln1_b"])
        # fully fused FFN (up-proj + GELU + down-proj + residual + layernorm)
        x = ffn_residual_layernorm(x, layer["w1"], layer["b1"], layer["w2"], layer["b2"],
                                   x, layer["ln2_g"], layer["ln2_b"])

    # --- CLS token + regressor, squeeze(-1) ---
    cls = x.reshape(B, S, H)[:, 0, :].astype(jnp.float32)          # (B, H)
    # TODO(synk): N=1 regressor kept in plain JAX (1-wide Pallas output = masked partial stores).
    out = cls @ params["reg_w"] + params["reg_b"]                  # (B, 1)
    return out[:, 0]                                               # (B,)


# ------------------------------- parameter handling --------------------------------

def init_params(key, vocab_size, hidden, n_layers, n_heads, intermediate, max_pos, type_vocab=2):
    """Torch-like raw f32 parameters (separate Q/K/V)."""
    del n_heads
    keys = jax.random.split(key, 4 + n_layers)

    def w(k, shape):
        return jax.random.normal(k, shape, jnp.float32) * 0.02

    params = {
        "word_emb": w(keys[0], (vocab_size, hidden)),
        "pos_emb": w(keys[1], (max_pos, hidden)),
        "type_emb": w(keys[2], (type_vocab, hidden)),
        "emb_ln_g": jnp.ones((hidden,), jnp.float32),
        "emb_ln_b": jnp.zeros((hidden,), jnp.float32),
        "reg_w": w(keys[3], (hidden, 1)),
        "reg_b": jnp.zeros((1,), jnp.float32),
        "layers": [],
    }
    for l in range(n_layers):
        lk = jax.random.split(keys[4 + l], 6)
        params["layers"].append({
            "wq": w(lk[0], (hidden, hidden)), "bq": jnp.zeros((hidden,), jnp.float32),
            "wk": w(lk[1], (hidden, hidden)), "bk": jnp.zeros((hidden,), jnp.float32),
            "wv": w(lk[2], (hidden, hidden)), "bv": jnp.zeros((hidden,), jnp.float32),
            "wo": w(lk[3], (hidden, hidden)), "bo": jnp.zeros((hidden,), jnp.float32),
            "ln1_g": jnp.ones((hidden,), jnp.float32), "ln1_b": jnp.zeros((hidden,), jnp.float32),
            "w1": w(lk[4], (hidden, intermediate)), "b1": jnp.zeros((intermediate,), jnp.float32),
            "w2": w(lk[5], (intermediate, hidden)), "b2": jnp.zeros((hidden,), jnp.float32),
            "ln2_g": jnp.ones((hidden,), jnp.float32), "ln2_b": jnp.zeros((hidden,), jnp.float32),
        })
    return params


def prepare_params(raw, num_heads):
    """One-time conversion: fuse Q/K/V into a per-head interleaved (H, 3H) weight and
    pre-cast all encoder matmul weights to bf16. Biases / LN params / embeddings stay f32."""
    p = {k: raw[k] for k in ("word_emb", "pos_emb", "type_emb", "emb_ln_g", "emb_ln_b",
                             "reg_w", "reg_b")}
    p["layers"] = []
    for l in raw["layers"]:
        H = l["wq"].shape[0]
        d = H // num_heads
        w_qkv = jnp.stack([w.reshape(H, num_heads, d) for w in (l["wq"], l["wk"], l["wv"])],
                          axis=2).reshape(H, 3 * H)                 # per head: [q_h|k_h|v_h]
        b_qkv = jnp.stack([b.reshape(num_heads, d) for b in (l["bq"], l["bk"], l["bv"])],
                          axis=1).reshape(3 * H)
        p["layers"].append({
            "w_qkv": w_qkv.astype(jnp.bfloat16), "b_qkv": b_qkv,
            "wo": l["wo"].astype(jnp.bfloat16), "bo": l["bo"],
            "ln1_g": l["ln1_g"], "ln1_b": l["ln1_b"],
            "w1": l["w1"].astype(jnp.bfloat16), "b1": l["b1"],
            "w2": l["w2"].astype(jnp.bfloat16), "b2": l["b2"],
            "ln2_g": l["ln2_g"], "ln2_b": l["ln2_b"],
        })
    return p


# ------------------------------------ main --------------------------------------

if __name__ == "__main__":
    B, S = 2, 8
    HIDDEN, N_HEADS, N_LAYERS, INTER = 128, 2, 2, 256
    VOCAB, MAX_POS = 128, 16

    key = jax.random.PRNGKey(0)
    pkey, ikey = jax.random.split(key)

    raw_params = init_params(pkey, VOCAB, HIDDEN, N_LAYERS, N_HEADS, INTER, MAX_POS)
    params = prepare_params(raw_params, N_HEADS)   # one-time bf16 cast + fused QKV layout

    input_ids = jax.random.randint(ikey, (B, S), 0, VOCAB, dtype=jnp.int32)
    attention_mask = jnp.ones((B, S), jnp.float32).at[1, 6:].set(0.0)  # pad last 2 of batch 1

    fwd = jax.jit(functools.partial(finbert_regressor_forward, num_heads=N_HEADS))
    out = jax.block_until_ready(fwd(params, input_ids, attention_mask))
    assert out.shape == (B,) and out.dtype == jnp.float32
    print("KERNEL_OK")
</pallas_src>

<mosaic_0001>
module attributes {stable_mosaic.version = 11 : i64} {
  func.func @_emb_ln_kernel(%arg0: i32, %arg1: i32, %arg2: memref<1x8x128xf32, #tpu.memory_space<vmem>>, %arg3: memref<1x8x128xf32, #tpu.memory_space<vmem>>, %arg4: memref<1x1x128xf32, #tpu.memory_space<vmem>>, %arg5: memref<1x1x128xf32, #tpu.memory_space<vmem>>, %arg6: memref<1x1x128xf32, #tpu.memory_space<vmem>>, %arg7: memref<1x8x128xbf16, #tpu.memory_space<vmem>>) attributes {dimension_semantics = [#tpu.dimension_semantics<parallel>, #tpu.dimension_semantics<parallel>], iteration_bounds = array<i64: 2, 1>, scalar_prefetch = 0 : i64, scratch_operands = 0 : i64, tpu.core_type = #tpu.core_type<tc>, window_params = [{transform_indices = @transform_0, window_bounds = array<i64: 1, 8, 128>}, {transform_indices = @transform_1, window_bounds = array<i64: 1, 8, 128>}, {pipeline_mode = #tpu.pipeline_mode<synchronous>, transform_indices = @transform_2, window_bounds = array<i64: 1, 1, 128>}, {pipeline_mode = #tpu.pipeline_mode<synchronous>, transform_indices = @transform_3, window_bounds = array<i64: 1, 1, 128>}, {pipeline_mode = #tpu.pipeline_mode<synchronous>, transform_indices = @transform_4, window_bounds = array<i64: 1, 1, 128>}, {transform_indices = @transform_5, window_bounds = array<i64: 1, 8, 128>}]} {
    %c0 = arith.constant 0 : index
    %c0_0 = arith.constant 0 : index
    %c0_1 = arith.constant 0 : index
    %0 = vector.load %arg2[%c0, %c0_0, %c0_1] : memref<1x8x128xf32, #tpu.memory_space<vmem>>, vector<1x8x128xf32>
    %c0_2 = arith.constant 0 : index
    %c0_3 = arith.constant 0 : index
    %c0_4 = arith.constant 0 : index
    %1 = vector.load %arg3[%c0_2, %c0_3, %c0_4] : memref<1x8x128xf32, #tpu.memory_space<vmem>>, vector<1x8x128xf32>
    %2 = arith.addf %0, %1 : vector<1x8x128xf32>
    %c0_5 = arith.constant 0 : index
    %c0_6 = arith.constant 0 : index
    %c0_7 = arith.constant 0 : index
    %3 = vector.load %arg4[%c0_5, %c0_6, %c0_7] : memref<1x1x128xf32, #tpu.memory_space<vmem>>, vector<1x1x128xf32>
    %4 = vector.broadcast %3 : vector<1x1x128xf32> to vector<1x8x128xf32>
    %5 = arith.addf %2, %4 : vector<1x8x128xf32>
    %cst = arith.constant dense<0.000000e+00> : vector<1x8xf32>
    %6 = vector.multi_reduction <add>, %5, %cst [2] : vector<1x8x128xf32> to vector<1x8xf32>
    %7 = vector.shape_cast %6 : vector<1x8xf32> to vector<1x8x1xf32>
    %cst_8 = arith.constant 1.280000e+02 : f32
    %8 = vector.broadcast %cst_8 : f32 to vector<1x8x1xf32>
    %9 = arith.divf %7, %8 : vector<1x8x1xf32>
    %10 = vector.broadcast %9 : vector<1x8x1xf32> to vector<1x8x128xf32>
    %11 = arith.subf %5, %10 : vector<1x8x128xf32>
    %12 = arith.mulf %11, %11 : vector<1x8x128xf32>
    %cst_9 = arith.constant dense<0.000000e+00> : vector<1x8xf32>
    %13 = vector.multi_reduction <add>, %12, %cst_9 [2] : vector<1x8x128xf32> to vector<1x8xf32>
    %14 = vector.shape_cast %13 : vector<1x8xf32> to vector<1x8x1xf32>
    %cst_10 = arith.constant 1.280000e+02 : f32
    %15 = vector.broadcast %cst_10 : f32 to vector<1x8x1xf32>
    %16 = arith.divf %14, %15 : vector<1x8x1xf32>
    %cst_11 = arith.constant 9.99999996E-13 : f32
    %17 = vector.broadcast %cst_11 : f32 to vector<1x8x1xf32>
    %18 = arith.addf %16, %17 : vector<1x8x1xf32>
    %19 = math.rsqrt %18 : vector<1x8x1xf32>
    %20 = vector.broadcast %19 : vector<1x8x1xf32> to vector<1x8x128xf32>
    %21 = arith.mulf %11, %20 : vector<1x8x128xf32>
    %c0_12 = arith.constant 0 : index
    %c0_13 = arith.constant 0 : index
    %c0_14 = arith.constant 0 : index
    %22 = vector.load %arg5[%c0_12, %c0_13, %c0_14] : memref<1x1x128xf32, #tpu.memory_space<vmem>>, vector<1x1x128xf32>
    %23 = vector.broadcast %22 : vector<1x1x128xf32> to vector<1x8x128xf32>
    %24 = arith.mulf %21, %23 : vector<1x8x128xf32>
    %c0_15 = arith.constant 0 : index
    %c0_16 = arith.constant 0 : index
    %c0_17 = arith.constant 0 : index
    %25 = vector.load %arg6[%c0_15, %c0_16, %c0_17] : memref<1x1x128xf32, #tpu.memory_space<vmem>>, vector<1x1x128xf32>
    %26 = vector.broadcast %25 : vector<1x1x128xf32> to vector<1x8x128xf32>
    %27 = arith.addf %24, %26 : vector<1x8x128xf32>
    %28 = arith.truncf %27 : vector<1x8x128xf32> to vector<1x8x128xbf16>
    %c0_18 = arith.constant 0 : index
    %c0_19 = arith.constant 0 : index
    %c0_20 = arith.constant 0 : index
    %29 = vector.load %arg7[%c0_18, %c0_19, %c0_20] : memref<1x8x128xbf16, #tpu.memory_space<vmem>>, vector<1x8x128xbf16>
    tpu.vector_store %arg7[%c0_18, %c0_19, %c0_20], %28 {strides = array<i32>} : memref<1x8x128xbf16, #tpu.memory_space<vmem>>, vector<1x8x128xbf16>,
    return
  }
  func.func @transform_0(%arg0: i32, %arg1: i32) -> (i32, i32, i32) {
    %c0_i32 = arith.constant 0 : i32
    %c0_i32_0 = arith.constant 0 : i32
    return %arg0, %arg1, %c0_i32 : i32, i32, i32
  }
  func.func @transform_1(%arg0: i32, %arg1: i32) -> (i32, i32, i32) {
    %c0_i32 = arith.constant 0 : i32
    %c0_i32_0 = arith.constant 0 : i32
    %c0_i32_1 = arith.constant 0 : i32
    return %c0_i32, %arg1, %c0_i32_0 : i32, i32, i32
  }
  func.func @transform_2(%arg0: i32, %arg1: i32) -> (i32, i32, i32) {
    %c0_i32 = arith.constant 0 : i32
    %c0_i32_0 = arith.constant 0 : i32
    %c0_i32_1 = arith.constant 0 : i32
    %c0_i32_2 = arith.constant 0 : i32
    return %c0_i32, %c0_i32_0, %c0_i32_1 : i32, i32, i32
  }
  func.func @transform_3(%arg0: i32, %arg1: i32) -> (i32, i32, i32) {
    %c0_i32 = arith.constant 0 : i32
    %c0_i32_0 = arith.constant 0 : i32
    %c0_i32_1 = arith.constant 0 : i32
    %c0_i32_2 = arith.constant 0 : i32
    return %c0_i32, %c0_i32_0, %c0_i32_1 : i32, i32, i32
  }
  func.func @transform_4(%arg0: i32, %arg1: i32) -> (i32, i32, i32) {
    %c0_i32 = arith.constant 0 : i32
    %c0_i32_0 = arith.constant 0 : i32
    %c0_i32_1 = arith.constant 0 : i32
    %c0_i32_2 = arith.constant 0 : i32
    return %c0_i32, %c0_i32_0, %c0_i32_1 : i32, i32, i32
  }
  func.func @transform_5(%arg0: i32, %arg1: i32) -> (i32, i32, i32) {
    %c0_i32 = arith.constant 0 : i32
    %c0_i32_0 = arith.constant 0 : i32
    return %arg0, %arg1, %c0_i32 : i32, i32, i32
  }
}

module attributes {stable_mosaic.version = 11 : i64} {
  func.func @_dense_kernel(%arg0: i32, %arg1: memref<16x128xbf16, #tpu.memory_space<vmem>>, %arg2: memref<128x384xbf16, #tpu.memory_space<vmem>>, %arg3: memref<1x384xf32, #tpu.memory_space<vmem>>, %arg4: memref<16x384xbf16, #tpu.memory_space<vmem>>) attributes {dimension_semantics = [#tpu.dimension_semantics<parallel>], iteration_bounds = array<i64: 1>, scalar_prefetch = 0 : i64, scratch_operands = 0 : i64, tpu.core_type = #tpu.core_type<tc>, window_params = [{transform_indices = @transform_0, window_bounds = array<i64: 16, 128>}, {pipeline_mode = #tpu.pipeline_mode<synchronous>, transform_indices = @transform_1, window_bounds = array<i64: 128, 384>}, {pipeline_mode = #tpu.pipeline_mode<synchronous>, transform_indices = @transform_2, window_bounds = array<i64: 1, 384>}, {transform_indices = @transform_3, window_bounds = array<i64: 16, 384>}]} {
    %c0 = arith.constant 0 : index
    %c0_0 = arith.constant 0 : index
    %0 = vector.load %arg1[%c0, %c0_0] : memref<16x128xbf16, #tpu.memory_space<vmem>>, vector<16x128xbf16>
    %c0_1 = arith.constant 0 : index
    %c0_2 = arith.constant 0 : index
    %1 = vector.load %arg2[%c0_1, %c0_2] : memref<128x384xbf16, #tpu.memory_space<vmem>>, vector<128x384xbf16>
    %cst = arith.constant dense<0.000000e+00> : vector<16x384xf32>
    %2 = tpu.matmul %0, %1, %cst {dimension_numbers = #tpu.dot_dimension_numbers<[1], [0], [0], [1], [0, 0, 1, 1], [], []>} : vector<16x128xbf16>, vector<128x384xbf16>, vector<16x384xf32> -> vector<16x384xf32>
    %c0_3 = arith.constant 0 : index
    %c0_4 = arith.constant 0 : index
    %3 = vector.load %arg3[%c0_3, %c0_4] : memref<1x384xf32, #tpu.memory_space<vmem>>, vector<1x384xf32>
    %4 = vector.broadcast %3 : vector<1x384xf32> to vector<16x384xf32>
    %5 = arith.addf %2, %4 : vector<16x384xf32>
    %6 = arith.truncf %5 : vector<16x384xf32> to vector<16x384xbf16>
    %c0_5 = arith.constant 0 : index
    %c0_6 = arith.constant 0 : index
    %7 = vector.load %arg4[%c0_5, %c0_6] : memref<16x384xbf16, #tpu.memory_space<vmem>>, vector<16x384xbf16>
    tpu.vector_store %arg4[%c0_5, %c0_6], %6 {strides = array<i32>} : memref<16x384xbf16, #tpu.memory_space<vmem>>, vector<16x384xbf16>,
    return
  }
  func.func @transform_0(%arg0: i32) -> (i32, i32) {
    %c0_i32 = arith.constant 0 : i32
    %c0_i32_0 = arith.constant 0 : i32
    return %arg0, %c0_i32 : i32, i32
  }
  func.func @transform_1(%arg0: i32) -> (i32, i32) {
    %c0_i32 = arith.constant 0 : i32
    %c0_i32_0 = arith.constant 0 : i32
    %c0_i32_1 = arith.constant 0 : i32
    return %c0_i32, %c0_i32_0 : i32, i32
  }
  func.func @transform_2(%arg0: i32) -> (i32, i32) {
    %c0_i32 = arith.constant 0 : i32
    %c0_i32_0 = arith.constant 0 : i32
    %c0_i32_1 = arith.constant 0 : i32
    return %c0_i32, %c0_i32_0 : i32, i32
  }
  func.func @transform_3(%arg0: i32) -> (i32, i32) {
    %c0_i32 = arith.constant 0 : i32
    %c0_i32_0 = arith.constant 0 : i32
    return %arg0, %c0_i32 : i32, i32
  }
}

module attributes {stable_mosaic.version = 11 : i64} {
  func.func @_dense_res_ln_kernel(%arg0: i32, %arg1: memref<16x128xbf16, #tpu.memory_space<vmem>>, %arg2: memref<128x128xbf16, #tpu.memory_space<vmem>>, %arg3: memref<1x128xf32, #tpu.memory_space<vmem>>, %arg4: memref<16x128xbf16, #tpu.memory_space<vmem>>, %arg5: memref<1x128xf32, #tpu.memory_space<vmem>>, %arg6: memref<1x128xf32, #tpu.memory_space<vmem>>, %arg7: memref<16x128xbf16, #tpu.memory_space<vmem>>) attributes {dimension_semantics = [#tpu.dimension_semantics<parallel>], iteration_bounds = array<i64: 1>, scalar_prefetch = 0 : i64, scratch_operands = 0 : i64, tpu.core_type = #tpu.core_type<tc>, window_params = [{transform_indices = @transform_0, window_bounds = array<i64: 16, 128>}, {pipeline_mode = #tpu.pipeline_mode<synchronous>, transform_indices = @transform_1, window_bounds = array<i64: 128, 128>}, {pipeline_mode = #tpu.pipeline_mode<synchronous>, transform_indices = @transform_2, window_bounds = array<i64: 1, 128>}, {transform_indices = @transform_3, window_bounds = array<i64: 16, 128>}, {pipeline_mode = #tpu.pipeline_mode<synchronous>, transform_indices = @transform_4, window_bounds = array<i64: 1, 128>}, {pipeline_mode = #tpu.pipeline_mode<synchronous>, transform_indices = @transform_5, window_bounds = array<i64: 1, 128>}, {transform_indices = @transform_6, window_bounds = array<i64: 16, 128>}]} {
    %c0 = arith.constant 0 : index
    %c0_0 = arith.constant 0 : index
    %0 = vector.load %arg1[%c0, %c0_0] : memref<16x128xbf16, #tpu.memory_space<vmem>>, vector<16x128xbf16>
    %c0_1 = arith.constant 0 : index
    %c0_2 = arith.constant 0 : index
    %1 = vector.load %arg2[%c0_1, %c0_2] : memref<128x128xbf16, #tpu.memory_space<vmem>>, vector<128x128xbf16>
    %cst = arith.constant dense<0.000000e+00> : vector<16x128xf32>
    %2 = tpu.matmul %0, %1, %cst {dimension_numbers = #tpu.dot_dimension_numbers<[1], [0], [0], [1], [0, 0, 1, 1], [], []>} : vector<16x128xbf16>, vector<128x128xbf16>, vector<16x128xf32> -> vector<16x128xf32>
    %c0_3 = arith.constant 0 : index
    %c0_4 = arith.constant 0 : index
    %3 = vector.load %arg3[%c0_3, %c0_4] : memref<1x128xf32, #tpu.memory_space<vmem>>, vector<1x128xf32>
    %4 = vector.broadcast %3 : vector<1x128xf32> to vector<16x128xf32>
    %5 = arith.addf %2, %4 : vector<16x128xf32>
    %c0_5 = arith.constant 0 : index
    %c0_6 = arith.constant 0 : index
    %6 = vector.load %arg4[%c0_5, %c0_6] : memref<16x128xbf16, #tpu.memory_space<vmem>>, vector<16x128xbf16>
    %7 = arith.extf %6 : vector<16x128xbf16> to vector<16x128xf32>
    %8 = arith.addf %5, %7 : vector<16x128xf32>
    %cst_7 = arith.constant dense<0.000000e+00> : vector<16xf32>
    %9 = vector.multi_reduction <add>, %8, %cst_7 [1] : vector<16x128xf32> to vector<16xf32>
    %10 = vector.shape_cast %9 : vector<16xf32> to vector<16x1xf32>
    %cst_8 = arith.constant 1.280000e+02 : f32
    %11 = vector.broadcast %cst_8 : f32 to vector<16x1xf32>
    %12 = arith.divf %10, %11 : vector<16x1xf32>
    %13 = vector.broadcast %12 : vector<16x1xf32> to vector<16x128xf32>
    %14 = arith.subf %8, %13 : vector<16x128xf32>
    %15 = arith.mulf %14, %14 : vector<16x128xf32>
    %cst_9 = arith.constant dense<0.000000e+00> : vector<16xf32>
    %16 = vector.multi_reduction <add>, %15, %cst_9 [1] : vector<16x128xf32> to vector<16xf32>
    %17 = vector.shape_cast %16 : vector<16xf32> to vector<16x1xf32>
    %cst_10 = arith.constant 1.280000e+02 : f32
    %18 = vector.broadcast %cst_10 : f32 to vector<16x1xf32>
    %19 = arith.divf %17, %18 : vector<16x1xf32>
    %cst_11 = arith.constant 9.99999996E-13 : f32
    %20 = vector.broadcast %cst_11 : f32 to vector<16x1xf32>
    %21 = arith.addf %19, %20 : vector<16x1xf32>
    %22 = math.rsqrt %21 : vector<16x1xf32>
    %23 = vector.broadcast %22 : vector<16x1xf32> to vector<16x128xf32>
    %24 = arith.mulf %14, %23 : vector<16x128xf32>
    %c0_12 = arith.constant 0 : index
    %c0_13 = arith.constant 0 : index
    %25 = vector.load %arg5[%c0_12, %c0_13] : memref<1x128xf32, #tpu.memory_space<vmem>>, vector<1x128xf32>
    %26 = vector.broadcast %25 : vector<1x128xf32> to vector<16x128xf32>
    %27 = arith.mulf %24, %26 : vector<16x128xf32>
    %c0_14 = arith.constant 0 : index
    %c0_15 = arith.constant 0 : index
    %28 = vector.load %arg6[%c0_14, %c0_15] : memref<1x128xf32, #tpu.memory_space<vmem>>, vector<1x128xf32>
    %29 = vector.broadcast %28 : vector<1x128xf32> to vector<16x128xf32>
    %30 = arith.addf %27, %29 : vector<16x128xf32>
    %31 = arith.truncf %30 : vector<16x128xf32> to vector<16x128xbf16>
    %c0_16 = arith.constant 0 : index
    %c0_17 = arith.constant 0 : index
    %32 = vector.load %arg7[%c0_16, %c0_17] : memref<16x128xbf16, #tpu.memory_space<vmem>>, vector<16x128xbf16>
    tpu.vector_store %arg7[%c0_16, %c0_17], %31 {strides = array<i32>} : memref<16x128xbf16, #tpu.memory_space<vmem>>, vector<16x128xbf16>,
    return
  }
  func.func @transform_0(%arg0: i32) -> (i32, i32) {
    %c0_i32 = arith.constant 0 : i32
    %c0_i32_0 = arith.constant 0 : i32
    return %arg0, %c0_i32 : i32, i32
  }
  func.func @transform_1(%arg0: i32) -> (i32, i32) {
    %c0_i32 = arith.constant 0 : i32
    %c0_i32_0 = arith.constant 0 : i32
    %c0_i32_1 = arith.constant 0 : i32
    return %c0_i32, %c0_i32_0 : i32, i32
  }
  func.func @transform_2(%arg0: i32) -> (i32, i32) {
    %c0_i32 = arith.constant 0 : i32
    %c0_i32_0 = arith.constant 0 : i32
    %c0_i32_1 = arith.constant 0 : i32
    return %c0_i32, %c0_i32_0 : i32, i32
  }
  func.func @transform_3(%arg0: i32) -> (i32, i32) {
    %c0_i32 = arith.constant 0 : i32
    %c0_i32_0 = arith.constant 0 : i32
    return %arg0, %c0_i32 : i32, i32
  }
  func.func @transform_4(%arg0: i32) -> (i32, i32) {
    %c0_i32 = arith.constant 0 : i32
    %c0_i32_0 = arith.constant 0 : i32
    %c0_i32_1 = arith.constant 0 : i32
    return %c0_i32, %c0_i32_0 : i32, i32
  }
  func.func @transform_5(%arg0: i32) -> (i32, i32) {
    %c0_i32 = arith.constant 0 : i32
    %c0_i32_0 = arith.constant 0 : i32
    %c0_i32_1 = arith.constant 0 : i32
    return %c0_i32, %c0_i32_0 : i32, i32
  }
  func.func @transform_6(%arg0: i32) -> (i32, i32) {
    %c0_i32 = arith.constant 0 : i32
    %c0_i32_0 = arith.constant 0 : i32
    return %arg0, %c0_i32 : i32, i32
  }
}

module attributes {stable_mosaic.version = 11 : i64} {
  func.func @_attention_kernel(%arg0: i32, %arg1: i32, %arg2: memref<1x8x384xbf16, #tpu.memory_space<vmem>>, %arg3: memref<1x1x8xf32, #tpu.memory_space<vmem>>, %arg4: memref<1x8x128xbf16, #tpu.memory_space<vmem>>) attributes {dimension_semantics = [#tpu.dimension_semantics<parallel>, #tpu.dimension_semantics<parallel>], iteration_bounds = array<i64: 2, 1>, scalar_prefetch = 0 : i64, scratch_operands = 0 : i64, tpu.core_type = #tpu.core_type<tc>, window_params = [{transform_indices = @transform_0, window_bounds = array<i64: 1, 8, 384>}, {transform_indices = @transform_1, window_bounds = array<i64: 1, 1, 8>}, {transform_indices = @transform_2, window_bounds = array<i64: 1, 8, 128>}]} {
    %c0 = arith.constant 0 : index
    %c0_0 = arith.constant 0 : index
    %c0_1 = arith.constant 0 : index
    %0 = vector.load %arg2[%c0, %c0_0, %c0_1] : memref<1x8x384xbf16, #tpu.memory_space<vmem>>, vector<1x8x384xbf16>
    %1 = vector.shape_cast %0 : vector<1x8x384xbf16> to vector<8x384xbf16>
    %c0_2 = arith.constant 0 : index
    %c0_3 = arith.constant 0 : index
    %c0_4 = arith.constant 0 : index
    %2 = vector.load %arg3[%c0_2, %c0_3, %c0_4] : memref<1x1x8xf32, #tpu.memory_space<vmem>>, vector<1x1x8xf32>
    %3 = vector.shape_cast %2 : vector<1x1x8xf32> to vector<1x8xf32>
    %4 = vector.extract_strided_slice %1 {offsets = [0, 0], sizes = [8, 64], strides = [1, 1]} : vector<8x384xbf16> to vector<8x64xbf16>
    %5 = vector.extract_strided_slice %1 {offsets = [0, 64], sizes = [8, 64], strides = [1, 1]} : vector<8x384xbf16> to vector<8x64xbf16>
    %6 = vector.extract_strided_slice %1 {offsets = [0, 128], sizes = [8, 64], strides = [1, 1]} : vector<8x384xbf16> to vector<8x64xbf16>
    %cst = arith.constant dense<0.000000e+00> : vector<8x8xf32>
    %7 = tpu.matmul %4, %5, %cst {dimension_numbers = #tpu.dot_dimension_numbers<[1], [1], [0], [0], [0, 0, 1, 0], [], []>} : vector<8x64xbf16>, vector<8x64xbf16>, vector<8x8xf32> -> vector<8x8xf32>
    %cst_5 = arith.constant 1.250000e-01 : f32
    %8 = vector.broadcast %cst_5 : f32 to vector<8x8xf32>
    %9 = arith.mulf %7, %8 : vector<8x8xf32>
    %10 = vector.broadcast %3 : vector<1x8xf32> to vector<8x8xf32>
    %11 = arith.addf %9, %10 : vector<8x8xf32>
    %cst_6 = arith.constant dense<0xFF800000> : vector<8xf32>
    %12 = vector.multi_reduction <maximumf>, %11, %cst_6 [1] : vector<8x8xf32> to vector<8xf32>
    %13 = vector.shape_cast %12 : vector<8xf32> to vector<8x1xf32>
    %14 = vector.broadcast %13 : vector<8x1xf32> to vector<8x8xf32>
    %15 = arith.subf %11, %14 : vector<8x8xf32>
    %16 = math.exp %15 : vector<8x8xf32>
    %cst_7 = arith.constant dense<0.000000e+00> : vector<8xf32>
    %17 = vector.multi_reduction <add>, %16, %cst_7 [1] : vector<8x8xf32> to vector<8xf32>
    %18 = vector.shape_cast %17 : vector<8xf32> to vector<8x1xf32>
    %19 = tpu.reciprocal %18 {approx = true} : vector<8x1xf32> -> vector<8x1xf32>
    %20 = vector.broadcast %19 : vector<8x1xf32> to vector<8x8xf32>
    %21 = arith.mulf %16, %20 : vector<8x8xf32>
    %22 = arith.truncf %21 : vector<8x8xf32> to vector<8x8xbf16>
    %cst_8 = arith.constant dense<0.000000e+00> : vector<8x64xf32>
    %23 = tpu.matmul %22, %6, %cst_8 {dimension_numbers = #tpu.dot_dimension_numbers<[1], [0], [0], [1], [0, 0, 1, 1], [], []>} : vector<8x8xbf16>, vector<8x64xbf16>, vector<8x64xf32> -> vector<8x64xf32>
    %24 = vector.extract_strided_slice %1 {offsets = [0, 192], sizes = [8, 64], strides = [1, 1]} : vector<8x384xbf16> to vector<8x64xbf16>
    %25 = vector.extract_strided_slice %1 {offsets = [0, 256], sizes = [8, 64], strides = [1, 1]} : vector<8x384xbf16> to vector<8x64xbf16>
    %26 = vector.extract_strided_slice %1 {offsets = [0, 320], sizes = [8, 64], strides = [1, 1]} : vector<8x384xbf16> to vector<8x64xbf16>
    %cst_9 = arith.constant dense<0.000000e+00> : vector<8x8xf32>
    %27 = tpu.matmul %24, %25, %cst_9 {dimension_numbers = #tpu.dot_dimension_numbers<[1], [1], [0], [0], [0, 0, 1, 0], [], []>} : vector<8x64xbf16>, vector<8x64xbf16>, vector<8x8xf32> -> vector<8x8xf32>
    %cst_10 = arith.constant 1.250000e-01 : f32
    %28 = vector.broadcast %cst_10 : f32 to vector<8x8xf32>
    %29 = arith.mulf %27, %28 : vector<8x8xf32>
    %30 = vector.broadcast %3 : vector<1x8xf32> to vector<8x8xf32>
    %31 = arith.addf %29, %30 : vector<8x8xf32>
    %cst_11 = arith.constant dense<0xFF800000> : vector<8xf32>
    %32 = vector.multi_reduction <maximumf>, %31, %cst_11 [1] : vector<8x8xf32> to vector<8xf32>
    %33 = vector.shape_cast %32 : vector<8xf32> to vector<8x1xf32>
    %34 = vector.broadcast %33 : vector<8x1xf32> to vector<8x8xf32>
    %35 = arith.subf %31, %34 : vector<8x8xf32>
    %36 = math.exp %35 : vector<8x8xf32>
    %cst_12 = arith.constant dense<0.000000e+00> : vector<8xf32>
    %37 = vector.multi_reduction <add>, %36, %cst_12 [1] : vector<8x8xf32> to vector<8xf32>
    %38 = vector.shape_cast %37 : vector<8xf32> to vector<8x1xf32>
    %39 = tpu.reciprocal %38 {approx = true} : vector<8x1xf32> -> vector<8x1xf32>
    %40 = vector.broadcast %39 : vector<8x1xf32> to vector<8x8xf32>
    %41 = arith.mulf %36, %40 : vector<8x8xf32>
    %42 = arith.truncf %41 : vector<8x8xf32> to vector<8x8xbf16>
    %cst_13 = arith.constant dense<0.000000e+00> : vector<8x64xf32>
    %43 = tpu.matmul %42, %26, %cst_13 {dimension_numbers = #tpu.dot_dimension_numbers<[1], [0], [0], [1], [0, 0, 1, 1], [], []>} : vector<8x8xbf16>, vector<8x64xbf16>, vector<8x64xf32> -> vector<8x64xf32>
    %44 = tpu.concatenate %23, %43 in 1 : vector<8x64xf32>, vector<8x64xf32> -> vector<8x128xf32>
    %45 = arith.truncf %44 : vector<8x128xf32> to vector<8x128xbf16>
    %c0_14 = arith.constant 0 : index
    %c0_15 = arith.constant 0 : index
    %c0_16 = arith.constant 0 : index
    %46 = vector.load %arg4[%c0_14, %c0_15, %c0_16] : memref<1x8x128xbf16, #tpu.memory_space<vmem>>, vector<1x8x128xbf16>
    %47 = vector.shape_cast %46 : vector<1x8x128xbf16> to vector<8x128xbf16>
    %48 = vector.shape_cast %45 : vector<8x128xbf16> to vector<1x8x128xbf16>
    tpu.vector_store %arg4[%c0_14, %c0_15, %c0_16], %48 {strides = array<i32>} : memref<1x8x128xbf16, #tpu.memory_space<vmem>>, vector<1x8x128xbf16>,
    return
  }
  func.func @transform_0(%arg0: i32, %arg1: i32) -> (i32, i32, i32) {
    %c0_i32 = arith.constant 0 : i32
    %c0_i32_0 = arith.constant 0 : i32
    return %arg0, %c0_i32, %arg1 : i32, i32, i32
  }
  func.func @transform_1(%arg0: i32, %arg1: i32) -> (i32, i32, i32) {
    %c0_i32 = arith.constant 0 : i32
    %c0_i32_0 = arith.constant 0 : i32
    %c0_i32_1 = arith.constant 0 : i32
    return %arg0, %c0_i32, %c0_i32_0 : i32, i32, i32
  }
  func.func @transform_2(%arg0: i32, %arg1: i32) -> (i32, i32, i32) {
    %c0_i32 = arith.constant 0 : i32
    %c0_i32_0 = arith.constant 0 : i32
    return %arg0, %c0_i32, %arg1 : i32, i32, i32
  }
}

module attributes {stable_mosaic.version = 11 : i64} {
  func.func @_ffn_kernel(%arg0: i32, %arg1: i32, %arg2: memref<16x128xbf16, #tpu.memory_space<vmem>>, %arg3: memref<128x256xbf16, #tpu.memory_space<vmem>>, %arg4: memref<1x256xf32, #tpu.memory_space<vmem>>, %arg5: memref<256x128xbf16, #tpu.memory_space<vmem>>, %arg6: memref<1x128xf32, #tpu.memory_space<vmem>>, %arg7: memref<16x128xbf16, #tpu.memory_space<vmem>>, %arg8: memref<1x128xf32, #tpu.memory_space<vmem>>, %arg9: memref<1x128xf32, #tpu.memory_space<vmem>>, %arg10: memref<16x128xbf16, #tpu.memory_space<vmem>>, %arg11: memref<16x128xf32, #tpu.memory_space<vmem>>) attributes {dimension_semantics = [#tpu.dimension_semantics<parallel>, #tpu.dimension_semantics<arbitrary>], iteration_bounds = array<i64: 1, 1>, scalar_prefetch = 0 : i64, scratch_operands = 1 : i64, tpu.core_type = #tpu.core_type<tc>, window_params = [{transform_indices = @transform_0, window_bounds = array<i64: 16, 128>}, {transform_indices = @transform_1, window_bounds = array<i64: 128, 256>}, {transform_indices = @transform_2, window_bounds = array<i64: 1, 256>}, {transform_indices = @transform_3, window_bounds = array<i64: 256, 128>}, {pipeline_mode = #tpu.pipeline_mode<synchronous>, transform_indices = @transform_4, window_bounds = array<i64: 1, 128>}, {transform_indices = @transform_5, window_bounds = array<i64: 16, 128>}, {pipeline_mode = #tpu.pipeline_mode<synchronous>, transform_indices = @transform_6, window_bounds = array<i64: 1, 128>}, {pipeline_mode = #tpu.pipeline_mode<synchronous>, transform_indices = @transform_7, window_bounds = array<i64: 1, 128>}, {transform_indices = @transform_8, window_bounds = array<i64: 16, 128>}]} {
    %c0_i32 = arith.constant 0 : i32
    %0 = arith.cmpi eq, %arg1, %c0_i32 : i32
    %1 = arith.extui %0 : i1 to i32
    %c0_i32_0 = arith.constant 0 : i32
    %2 = arith.cmpi ne, %1, %c0_i32_0 : i32
    scf.if %2 {
      %cst_31 = arith.constant 0.000000e+00 : f32
      %59 = vector.broadcast %cst_31 : f32 to vector<16x128xf32>
      %c0_32 = arith.constant 0 : index
      %c0_33 = arith.constant 0 : index
      %60 = vector.load %arg11[%c0_32, %c0_33] : memref<16x128xf32, #tpu.memory_space<vmem>>, vector<16x128xf32>
      tpu.vector_store %arg11[%c0_32, %c0_33], %59 {strides = array<i32>} : memref<16x128xf32, #tpu.memory_space<vmem>>, vector<16x128xf32>,
    } else {
    }
    %c0 = arith.constant 0 : index
    %c0_1 = arith.constant 0 : index
    %3 = vector.load %arg2[%c0, %c0_1] : memref<16x128xbf16, #tpu.memory_space<vmem>>, vector<16x128xbf16>
    %c0_2 = arith.constant 0 : index
    %c0_3 = arith.constant 0 : index
    %4 = vector.load %arg3[%c0_2, %c0_3] : memref<128x256xbf16, #tpu.memory_space<vmem>>, vector<128x256xbf16>
    %cst = arith.constant dense<0.000000e+00> : vector<16x256xf32>
    %5 = tpu.matmul %3, %4, %cst {dimension_numbers = #tpu.dot_dimension_numbers<[1], [0], [0], [1], [0, 0, 1, 1], [], []>} : vector<16x128xbf16>, vector<128x256xbf16>, vector<16x256xf32> -> vector<16x256xf32>
    %c0_4 = arith.constant 0 : index
    %c0_5 = arith.constant 0 : index
    %6 = vector.load %arg4[%c0_4, %c0_5] : memref<1x256xf32, #tpu.memory_space<vmem>>, vector<1x256xf32>
    %7 = vector.broadcast %6 : vector<1x256xf32> to vector<16x256xf32>
    %8 = arith.addf %5, %7 : vector<16x256xf32>
    %cst_6 = arith.constant 5.000000e-01 : f32
    %9 = vector.broadcast %cst_6 : f32 to vector<16x256xf32>
    %10 = arith.mulf %9, %8 : vector<16x256xf32>
    %cst_7 = arith.constant 0.707106769 : f32
    %11 = vector.broadcast %cst_7 : f32 to vector<16x256xf32>
    %12 = arith.mulf %8, %11 : vector<16x256xf32>
    %cst_8 = arith.constant 0.000000e+00 : f32
    %13 = vector.broadcast %cst_8 : f32 to vector<16x256xf32>
    %14 = arith.cmpf oge, %12, %13 : vector<16x256xf32>
    %cst_9 = arith.constant 1.000000e+00 : f32
    %cst_10 = arith.constant -1.000000e+00 : f32
    %15 = vector.broadcast %cst_9 : f32 to vector<16x256xf32>
    %16 = vector.broadcast %cst_10 : f32 to vector<16x256xf32>
    %17 = arith.select %14, %15, %16 : vector<16x256xi1>, vector<16x256xf32>
    %18 = math.absf %12 : vector<16x256xf32>
    %cst_11 = arith.constant 0.327591091 : f32
    %19 = vector.broadcast %cst_11 : f32 to vector<16x256xf32>
    %20 = arith.mulf %19, %18 : vector<16x256xf32>
    %cst_12 = arith.constant 1.000000e+00 : f32
    %21 = vector.broadcast %cst_12 : f32 to vector<16x256xf32>
    %22 = arith.addf %21, %20 : vector<16x256xf32>
    %cst_13 = arith.constant 1.000000e+00 : f32
    %23 = vector.broadcast %cst_13 : f32 to vector<16x256xf32>
    %24 = arith.divf %23, %22 : vector<16x256xf32>
    %cst_14 = arith.constant 1.06140542 : f32
    %25 = vector.broadcast %cst_14 : f32 to vector<16x256xf32>
    %26 = arith.mulf %25, %24 : vector<16x256xf32>
    %cst_15 = arith.constant -1.45315206 : f32
    %27 = vector.broadcast %cst_15 : f32 to vector<16x256xf32>
    %28 = arith.addf %26, %27 : vector<16x256xf32>
    %29 = arith.mulf %28, %24 : vector<16x256xf32>
    %cst_16 = arith.constant 1.42141378 : f32
    %30 = vector.broadcast %cst_16 : f32 to vector<16x256xf32>
    %31 = arith.addf %29, %30 : vector<16x256xf32>
    %32 = arith.mulf %31, %24 : vector<16x256xf32>
    %cst_17 = arith.constant -0.284496725 : f32
    %33 = vector.broadcast %cst_17 : f32 to vector<16x256xf32>
    %34 = arith.addf %32, %33 : vector<16x256xf32>
    %35 = arith.mulf %34, %24 : vector<16x256xf32>
    %cst_18 = arith.constant 0.254829586 : f32
    %36 = vector.broadcast %cst_18 : f32 to vector<16x256xf32>
    %37 = arith.addf %35, %36 : vector<16x256xf32>
    %38 = arith.mulf %37, %24 : vector<16x256xf32>
    %cst_19 = arith.constant 0.000000e+00 : f32
    %39 = vector.broadcast %cst_19 : f32 to vector<16x256xf32>
    %40 = arith.subf %39, %18 : vector<16x256xf32>
    %41 = arith.mulf %40, %18 : vector<16x256xf32>
    %42 = math.exp %41 : vector<16x256xf32>
    %43 = arith.mulf %38, %42 : vector<16x256xf32>
    %cst_20 = arith.constant 1.000000e+00 : f32
    %44 = vector.broadcast %cst_20 : f32 to vector<16x256xf32>
    %45 = arith.subf %44, %43 : vector<16x256xf32>
    %46 = arith.mulf %17, %45 : vector<16x256xf32>
    %cst_21 = arith.constant 1.000000e+00 : f32
    %47 = vector.broadcast %cst_21 : f32 to vector<16x256xf32>
    %48 = arith.addf %47, %46 : vector<16x256xf32>
    %49 = arith.mulf %10, %48 : vector<16x256xf32>
    %c0_22 = arith.constant 0 : index
    %c0_23 = arith.constant 0 : index
    %50 = vector.load %arg11[%c0_22, %c0_23] : memref<16x128xf32, #tpu.memory_space<vmem>>, vector<16x128xf32>
    %51 = arith.truncf %49 : vector<16x256xf32> to vector<16x256xbf16>
    %c0_24 = arith.constant 0 : index
    %c0_25 = arith.constant 0 : index
    %52 = vector.load %arg5[%c0_24, %c0_25] : memref<256x128xbf16, #tpu.memory_space<vmem>>, vector<256x128xbf16>
    %cst_26 = arith.constant dense<0.000000e+00> : vector<16x128xf32>
    %53 = tpu.matmul %51, %52, %cst_26 {dimension_numbers = #tpu.dot_dimension_numbers<[1], [0], [0], [1], [0, 0, 1, 1], [], []>} : vector<16x256xbf16>, vector<256x128xbf16>, vector<16x128xf32> -> vector<16x128xf32>
    %54 = arith.addf %50, %53 : vector<16x128xf32>
    %c0_27 = arith.constant 0 : index
    %c0_28 = arith.constant 0 : index
    %55 = vector.load %arg11[%c0_27, %c0_28] : memref<16x128xf32, #tpu.memory_space<vmem>>, vector<16x128xf32>
    tpu.vector_store %arg11[%c0_27, %c0_28], %54 {strides = array<i32>} : memref<16x128xf32, #tpu.memory_space<vmem>>, vector<16x128xf32>,
    %c0_i32_29 = arith.constant 0 : i32
    %56 = arith.cmpi eq, %arg1, %c0_i32_29 : i32
    %57 = arith.extui %56 : i1 to i32
    %c0_i32_30 = arith.constant 0 : i32
    %58 = arith.cmpi ne, %57, %c0_i32_30 : i32
    scf.if %58 {
      %c0_31 = arith.constant 0 : index
      %c0_32 = arith.constant 0 : index
      %59 = vector.load %arg11[%c0_31, %c0_32] : memref<16x128xf32, #tpu.memory_space<vmem>>, vector<16x128xf32>
      %c0_33 = arith.constant 0 : index
      %c0_34 = arith.constant 0 : index
      %60 = vector.load %arg6[%c0_33, %c0_34] : memref<1x128xf32, #tpu.memory_space<vmem>>, vector<1x128xf32>
      %61 = vector.broadcast %60 : vector<1x128xf32> to vector<16x128xf32>
      %62 = arith.addf %59, %61 : vector<16x128xf32>
      %c0_35 = arith.constant 0 : index
      %c0_36 = arith.constant 0 : index
      %63 = vector.load %arg7[%c0_35, %c0_36] : memref<16x128xbf16, #tpu.memory_space<vmem>>, vector<16x128xbf16>
      %64 = arith.extf %63 : vector<16x128xbf16> to vector<16x128xf32>
      %65 = arith.addf %62, %64 : vector<16x128xf32>
      %cst_37 = arith.constant dense<0.000000e+00> : vector<16xf32>
      %66 = vector.multi_reduction <add>, %65, %cst_37 [1] : vector<16x128xf32> to vector<16xf32>
      %67 = vector.shape_cast %66 : vector<16xf32> to vector<16x1xf32>
      %cst_38 = arith.constant 1.280000e+02 : f32
      %68 = vector.broadcast %cst_38 : f32 to vector<16x1xf32>
      %69 = arith.divf %67, %68 : vector<16x1xf32>
      %70 = vector.broadcast %69 : vector<16x1xf32> to vector<16x128xf32>
      %71 = arith.subf %65, %70 : vector<16x128xf32>
      %72 = arith.mulf %71, %71 : vector<16x128xf32>
      %cst_39 = arith.constant dense<0.000000e+00> : vector<16xf32>
      %73 = vector.multi_reduction <add>, %72, %cst_39 [1] : vector<16x128xf32> to vector<16xf32>
      %74 = vector.shape_cast %73 : vector<16xf32> to vector<16x1xf32>
      %cst_40 = arith.constant 1.280000e+02 : f32
      %75 = vector.broadcast %cst_40 : f32 to vector<16x1xf32>
      %76 = arith.divf %74, %75 : vector<16x1xf32>
      %cst_41 = arith.constant 9.99999996E-13 : f32
      %77 = vector.broadcast %cst_41 : f32 to vector<16x1xf32>
      %78 = arith.addf %76, %77 : vector<16x1xf32>
      %79 = math.rsqrt %78 : vector<16x1xf32>
      %80 = vector.broadcast %79 : vector<16x1xf32> to vector<16x128xf32>
      %81 = arith.mulf %71, %80 : vector<16x128xf32>
      %c0_42 = arith.constant 0 : index
      %c0_43 = arith.constant 0 : index
      %82 = vector.load %arg8[%c0_42, %c0_43] : memref<1x128xf32, #tpu.memory_space<vmem>>, vector<1x128xf32>
      %83 = vector.broadcast %82 : vector<1x128xf32> to vector<16x128xf32>
      %84 = arith.mulf %81, %83 : vector<16x128xf32>
      %c0_44 = arith.constant 0 : index
      %c0_45 = arith.constant 0 : index
      %85 = vector.load %arg9[%c0_44, %c0_45] : memref<1x128xf32, #tpu.memory_space<vmem>>, vector<1x128xf32>
      %86 = vector.broadcast %85 : vector<1x128xf32> to vector<16x128xf32>
      %87 = arith.addf %84, %86 : vector<16x128xf32>
      %88 = arith.truncf %87 : vector<16x128xf32> to vector<16x128xbf16>
      %c0_46 = arith.constant 0 : index
      %c0_47 = arith.constant 0 : index
      %89 = vector.load %arg10[%c0_46, %c0_47] : memref<16x128xbf16, #tpu.memory_space<vmem>>, vector<16x128xbf16>
      tpu.vector_store %arg10[%c0_46, %c0_47], %88 {strides = array<i32>} : memref<16x128xbf16, #tpu.memory_space<vmem>>, vector<16x128xbf16>,
    } else {
    }
    return
  }
  func.func @transform_0(%arg0: i32, %arg1: i32) -> (i32, i32) {
    %c0_i32 = arith.constant 0 : i32
    %c0_i32_0 = arith.constant 0 : i32
    return %arg0, %c0_i32 : i32, i32
  }
  func.func @transform_1(%arg0: i32, %arg1: i32) -> (i32, i32) {
    %c0_i32 = arith.constant 0 : i32
    %c0_i32_0 = arith.constant 0 : i32
    return %c0_i32, %arg1 : i32, i32
  }
  func.func @transform_2(%arg0: i32, %arg1: i32) -> (i32, i32) {
    %c0_i32 = arith.constant 0 : i32
    %c0_i32_0 = arith.constant 0 : i32
    return %c0_i32, %arg1 : i32, i32
  }
  func.func @transform_3(%arg0: i32, %arg1: i32) -> (i32, i32) {
    %c0_i32 = arith.constant 0 : i32
    %c0_i32_0 = arith.constant 0 : i32
    return %arg1, %c0_i32 : i32, i32
  }
  func.func @transform_4(%arg0: i32, %arg1: i32) -> (i32, i32) {
    %c0_i32 = arith.constant 0 : i32
    %c0_i32_0 = arith.constant 0 : i32
    %c0_i32_1 = arith.constant 0 : i32
    return %c0_i32, %c0_i32_0 : i32, i32
  }
  func.func @transform_5(%arg0: i32, %arg1: i32) -> (i32, i32) {
    %c0_i32 = arith.constant 0 : i32
    %c0_i32_0 = arith.constant 0 : i32
    return %arg0, %c0_i32 : i32, i32
  }
  func.func @transform_6(%arg0: i32, %arg1: i32) -> (i32, i32) {
    %c0_i32 = arith.constant 0 : i32
    %c0_i32_0 = arith.constant 0 : i32
    %c0_i32_1 = arith.constant 0 : i32
    return %c0_i32, %c0_i32_0 : i32, i32
  }
  func.func @transform_7(%arg0: i32, %arg1: i32) -> (i32, i32) {
    %c0_i32 = arith.constant 0 : i32
    %c0_i32_0 = arith.constant 0 : i32
    %c0_i32_1 = arith.constant 0 : i32
    return %c0_i32, %c0_i32_0 : i32, i32
  }
  func.func @transform_8(%arg0: i32, %arg1: i32) -> (i32, i32) {
    %c0_i32 = arith.constant 0 : i32
    %c0_i32_0 = arith.constant 0 : i32
    return %arg0, %c0_i32 : i32, i32
  }
}

</mosaic_0001>

<bundles_post_ra>
// kernel: finbert_regressor_forward.9
= control target key start
LH: loop header
LB: loop body
LE: loop exit
PB: predicated region body
PF: predicated region fallthrough
CT: control target
= control target key end

     0   :  { %s502_s18 = smov 0   ;;  %s504_s19 = smov 0   ;;  %s551_s0 = inlined_call_operand.vmem [shape: f32[2,8,128], index: 0, kind: input, shape index: {}]   ;;  %s552_s1 = inlined_call_operand.vmem [shape: f32[1,8,128], index: 1, kind: input, shape index: {}]   ;;  %s553_s2 = inlined_call_operand.vmem [shape: f32[1,1,128], index: 2, kind: input, shape index: {}]   ;;  %s554_s3 = inlined_call_operand.vmem [shape: f32[1,1,128], index: 3, kind: input, shape index: {}]   ;;  %s555_s4 = inlined_call_operand.vmem [shape: f32[1,1,128], index: 4, kind: input, shape index: {}]   ;;  %s556_s5 = inlined_call_operand.vmem [shape: bf16[2,8,128], index: 5, kind: output, shape index: {}]  }
   0x1   :  { %s506_s20 = smov 0  }
   0x2 LB: > { %s27_s21 = sadd.s32 1, %s465_s19  ;;  %p410_p0 = scmp.ge.s32.totalorder %s469_s20, 1  ;;  %s469_s20 = sphi %s506_s20, %s15_s20   ;;  %s465_s19 = sphi %s504_s19, %s558_s19   ;;  %s461_s18 = sphi %s502_s18, %s557_s18  }
   0x3   : > { %p29_p1 = scmp.ge.s32.totalorder %s27_s21, 2  ;;  %p214_p2 = scmp.lt.s32.totalorder %s469_s20, 3 }
   0x5   : > { %s560_s21 = smov (%p29_p1, %s27_s21), 0  ;;  %p215_p3 = pnand %p410_p0, %p214_p2 }
   0x6   : > { %p250_p4 = scmp.lt.s32.totalorder (!%p215_p3), %s461_s18, 1 }
   0x7   : > { %218 = sbr.rel (%p215_p3) target bundleno = 289 (0x121), region = 40 }
   0xc   : > { %s562_s18 = smov (!%p250_p4, %s461_s18), 1  ;;  %v269_v0 = vld [vmem:[%s552_s1] sm:$0xff]  ;;  %v471_v5 = vmov 128.0  }
   0xd   : > { %s411_s22 = sshll.u32 %s562_s18, 3  ;;  %v440_v1 = vld [vmem:[%s553_s2] ss:$0 sm:$0xff]  ;;  %443 = vrcp.f32 %v471_v5  ;;  %s412_s9 = sshll.u32 %s562_s18, 2 }
   0xe   : > { %s256_s27 = scalar_lea.vmem %s551_s0, %s411_s22  ;;  %v441_v25 = vld [vmem:[%s554_s3] ss:$0 sm:$0xff]  ;;  %s267_s12 = scalar_lea.vmem %s556_s5, %s412_s9 }
   0xf   : > { %v268_v2 = vld [vmem:[%s256_s27] sm:$0xff] }
  0x10   : > { %v270_v3 = vadd.f32 %v269_v0, %v268_v2  ;;  %v442_v27 = vld [vmem:[%s555_s4] ss:$0 sm:$0xff] }
  0x12   : > { %v275_v4 = vadd.f32 %v440_v1, %v270_v3 }
  0x13   : > { %v444_v6 = vpop.eup %443 }
  0x14   : > { %276 = vadd.xlane.f32.xlu0 %v275_v4  ;;  %v279_v7 = vmul.f32 128.0, %v444_v6  ;;  %vm283_vm0 = vweird.f32 %v444_v6 }
  0x16   : > { %v280_v8 = vsub.f32 1.0, %v279_v7 }
  0x18   : > { %v281_v9 = vmul.f32 %v444_v6, %v280_v8 }
  0x1a   : > { %v282_v10 = vadd.f32 %v444_v6, %v281_v9 }
  0x1c   : > { %v284_v11 = vsel %vm283_vm0, %v444_v6, %v282_v10 }
  0x87   : > { %v277_v12 = vpop.xlane.xlu0 %276 }
  0x88   : > { %v285_v13 = vmul.f32 %v284_v11, %v277_v12 }
  0x8a   : > { %v286_v14 = vsub.f32 %v275_v4, %v285_v13 }
  0x8c   : > { %v287_v15 = vmul.f32 %v286_v14, %v286_v14 }
  0x8e   : > { %288 = vadd.xlane.f32.xlu0 %v287_v15 }
 0x101   : > { %v289_v16 = vpop.xlane.xlu0 %288 }
 0x102   : > { %v290_v17 = vmul.f32 %v289_v16, %v284_v11 }
 0x104   : > { %v291_v18 = vadd.f32 1e-12, %v290_v17 }
 0x106   : > { %445 = vrsqrt.f32 %v291_v18  ;;  %vm298_vm2 = vweird.f32 %v291_v18 }
 0x10c   : > { %v446_v19 = vpop.eup %445 }
 0x10d   : > { %v293_v20 = vmul.f32 %v446_v19, %v291_v18  ;;  %vm299_vm1 = vweird.f32 %v446_v19 }
 0x10e   : > { %vm300_vm3 = vmor %vm298_vm2, %vm299_vm1 }
 0x10f   : > { %v294_v21 = vmul.f32 %v446_v19, %v293_v20 }
 0x111   : > { %v295_v22 = vmul.f32 0.5, %v294_v21 }
 0x113   : > { %v296_v23 = vsub.f32 1.5, %v295_v22 }
 0x115   : > { %v297_v24 = vmul.f32 %v446_v19, %v296_v23 }
 0x117   : > { %v301_v26 = vsel %vm300_vm3, %v446_v19, %v297_v24 }
 0x118   : > { %v302_v28 = vmul.f32 %v301_v26, %v286_v14 }
 0x11a   : > { %v307_v29 = vmul.f32 %v441_v25, %v302_v28 }
 0x11c   : > { %v312_v30 = vadd.f32 %v442_v27, %v307_v29 }
 0x11e   : > { %v313_v31 = vpack.c.bf16 %v312_v30, %v312_v30 }
 0x120   : > { %314 = vst [vmem:[%s267_s12] sm:$0xf] %v313_v31 }
 0x121 PF: > { %s15_s20 = sadd.s32 1, %s469_s20   ;;  %s557_s18 = smov %s465_s19 }
 0x122   : > { %p12_p5 = scmp.ge.s32.totalorder %s15_s20, 4   ;;  %s558_s19 = smov %s560_s21 }
 0x124   :  { %14 = sbr.rel (!%p12_p5) target bundleno = 2 (0x2), region = 73 }

// kernel: finbert_regressor_forward.11
= control target key start
LH: loop header
LB: loop body
LE: loop exit
PB: predicated region body
PF: predicated region fallthrough
CT: control target
= control target key end

     0   :  { %s501_s9 = smov 0   ;;  %s503_s10 = smov 0   ;;  %s557_s0 = inlined_call_operand.vmem [shape: bf16[2,8,384], index: 0, kind: input, shape index: {}]   ;;  %s558_s1 = inlined_call_operand.vmem [shape: f32[2,1,8], index: 1, kind: input, shape index: {}]   ;;  %s559_s2 = inlined_call_operand.vmem [shape: bf16[2,8,128], index: 2, kind: output, shape index: {}]  }
   0x1   :  { %s505_s11 = smov 0  }
   0x2 LB: > { %s24_s12 = sadd.s32 1, %s479_s10  ;;  %p417_p0 = scmp.ge.s32.totalorder %s483_s11, 1  ;;  %s483_s11 = sphi %s505_s11, %s12_s11   ;;  %s479_s10 = sphi %s503_s10, %s561_s10   ;;  %s475_s9 = sphi %s501_s9, %s560_s9  }
   0x3   : > { %p26_p1 = scmp.ge.s32.totalorder %s24_s12, 2  ;;  %p141_p2 = scmp.lt.s32.totalorder %s483_s11, 3 }
   0x5   : > { %s563_s12 = smov (%p26_p1, %s24_s12), 0  ;;  %p142_p3 = pnand %p417_p0, %p141_p2 }
   0x6   : > { %p173_p4 = scmp.lt.s32.totalorder (!%p142_p3), %s475_s9, 1  ;;  %s485_s17 = smov (!%p142_p3), 64  }
   0x7   : > { %145 = sbr.rel (%p142_p3) target bundleno = 780 (0x30c), region = 28 }
   0xc   : > { %s565_s9 = smov (!%p173_p4, %s475_s9), 1  ;;  %vm201_vm0 = vcmask 523264   ;;  %vm226_vm1 = vcmask 64512   ;;  %vm244_vm2 = vcmask 1043456  }
   0xd   : > { %s426_s13 = smul.u32 12, %s565_s9  ;;  %s184_s20 = scalar_lea.vmem %s558_s1, %s565_s9 }
   0xe   : > { %v452_v10 = vld [vmem:[%s184_s20] ss:$0 sm:$0xff]  ;;  %s419_s21 = sshll.u32 %s565_s9, 2 }
   0xf   : > { %s180_s16 = scalar_lea.vmem %s557_s0, %s426_s13  ;;  %s191_s24 = scalar_lea.vmem %s559_s2, %s419_s21 }
  0x10   : > { %v193_v0 = vld [vmem:[%s180_s16] sm:$0xff]  ;;  %v194_v1 = vld [vmem:[%s180_s16 + $0x8] sm:$0xf] }
  0x11   : > { %v239_v2 = vunpack.c.h.b16 %v193_v0  ;;  %v267_v3 = vsel %vm201_vm0, %v194_v1, 0  ;;  %v197_v5 = vunpack.c.l.b16 %v193_v0  ;;  %v297_v31 = vunpack.c.l.b16 %v194_v1 }
  0x12   : > { %276 = vmatpush.bf16.xpose.msra.mxu2 %v267_v3 }
  0x13   : > { %v240_v4 = vpack.c.b16 %v239_v2, %v239_v2  ;;  %v198_v6 = vpack.c.b16 %v197_v5, %v197_v5  ;;  %v298_v32 = vpack.c.b16 %v297_v31, %v297_v31 }
  0x15   : > { %261 = vrot.lane.b32.xlu0 %v240_v4, %s485_s17  ;;  %v246_v33 = vsel %vm244_vm2, %v240_v4, 0 }
  0x16   : > { %255 = vmatpush.bf16.msra.mxu1 %v246_v33 }
  0x1d   : > { %199 = vrot.lane.b32.xlu0 %v198_v6, %s485_s17 }
  0x87   : > { %v262_v7 = vpop.permute.xlu0 %261 }
  0x88   : > { %422 = vmatmul.msk.bf16.vlgmr.msra.gmra.mxu2 %vm201_vm0, %v262_v7 }
  0x8f   : > { %v200_v8 = vpop.permute.xlu0 %199 }
  0x90   : > { %v206_v9 = vsel %vm201_vm0, %v200_v8, 0 }
  0x91   : > { %215 = vmatpush.bf16.xpose.msra.mxu0 %v206_v9 }
  0x98   : > { %420 = vmatmul.msk.bf16.vlgmr.msra.gmra.mxu0 %vm201_vm0, %v193_v0 }
 0x10b   : > { %v278_v11 = vpop.f32.mrf.mxu2 }
 0x10c   : > { %v282_v12 = vmul.f32 0.125, %v278_v11 }
 0x10e   : > { %v283_v13 = vadd.f32 %v452_v10, %v282_v12 }
 0x110   : > { %v284_v14 = vsel %vm226_vm1, %v283_v13, -inf }
 0x111   : > { %285 = vmax.xlane.f32.xlu1 %v284_v14 }
 0x113   : > { %v280_v15 = vpop.f32.mrf.mxu2 }
 0x115   : > { %v217_v16 = vpop.f32.mrf.mxu0 }
 0x116   : > { %v221_v17 = vmul.f32 0.125, %v217_v16 }
 0x118   : > { %v225_v18 = vadd.f32 %v452_v10, %v221_v17 }
 0x11a   : > { %v227_v19 = vsel %vm226_vm1, %v225_v18, -inf }
 0x11b   : > { %228 = vmax.xlane.f32.xlu1 %v227_v19 }
 0x11d   : > { %v219_v20 = vpop.f32.mrf.mxu0 }
 0x184   : > { %v286_v21 = vpop.xlane.xlu1 %285 }
 0x185   : > { %v287_v22 = vsub.f32 %v283_v13, %v286_v21 }
 0x187   : > { %v288_v23 = vmul.f32 1.442695, %v287_v22 }
 0x189   : > { %453 = vpow2.f32 %v288_v23 }
 0x18e   : > { %v229_v24 = vpop.xlane.xlu1 %228 }
 0x18f   : > { %v454_v25 = vpop.eup %453  ;;  %v230_v26 = vsub.f32 %v225_v18, %v229_v24 }
 0x190   : > { %v290_v27 = vsel %vm226_vm1, %v454_v25, 0.0 }
 0x191   : > { %v231_v28 = vmul.f32 1.442695, %v230_v26  ;;  %291 = vadd.xlane.f32.xlu2 %v290_v27 }
 0x193   : > { %455 = vpow2.f32 %v231_v28 }
 0x199   : > { %v456_v29 = vpop.eup %455 }
 0x19a   : > { %v233_v30 = vsel %vm226_vm1, %v456_v29, 0.0 }
 0x19b   : > { %234 = vadd.xlane.f32.xlu0 %v233_v30 }
 0x1a9   : > { %299 = vrot.lane.b32.xlu2 %v298_v32, %s485_s17 }
 0x204   : > { %v292_v34 = vpop.xlane.xlu2 %291 }
 0x205   : > { %457 = vrcp.f32 %v292_v34 }
 0x20b   : > { %v458_v35 = vpop.eup %457 }
 0x20c   : > { %v300_v36 = vpop.permute.xlu2 %299  ;;  %v294_v37 = vmul.f32 %v458_v35, %v454_v25 }
 0x20d   : > { %v305_v38 = vsel %vm244_vm2, %v300_v36, 0 }
 0x20e   : > { %314 = vmatpush.bf16.msra.mxu3 %v305_v38  ;;  %v235_v39 = vpop.xlane.xlu0 %234  ;;  %v295_v40 = vpack.c.bf16 %v294_v37, %v294_v37 }
 0x20f   : > { %459 = vrcp.f32 %v235_v39 }
 0x211   : > { %423 = vmatmul.msk.bf16.vlgmr.msra.gmra.mxu3 %vm226_vm1, %v295_v40 }
 0x215   : > { %v460_v41 = vpop.eup %459 }
 0x216   : > { %v237_v42 = vmul.f32 %v460_v41, %v456_v29 }
 0x218   : > { %v238_v43 = vpack.c.bf16 %v237_v42, %v237_v42 }
 0x21a   : > { %421 = vmatmul.msk.bf16.vlgmr.msra.gmra.mxu1 %vm226_vm1, %v238_v43 }
 0x294   : > { %v316_v44 = vpop.f32.mrf.mxu3 }
 0x295   : > { %321 = vrot.lane.b32.xlu1 %v316_v44, %s485_s17 }
 0x297   : > { %v257_v45 = vpop.f32.mrf.mxu1 }
 0x29c   : > { %v318_v46 = vpop.f32.mrf.mxu3 }
 0x29f   : > { %v259_v47 = vpop.f32.mrf.mxu1 }
 0x307   : > { %v322_v48 = vpop.permute.xlu1 %321 }
 0x308   : > { %v324_v49 = vsel %vm201_vm0, %v257_v45, %v322_v48 }
 0x309   : > { %v325_v50 = vpack.c.bf16 %v324_v49, %v324_v49 }
 0x30b   : > { %326 = vst [vmem:[%s191_s24] sm:$0xf] %v325_v50 }
 0x30c PF: > { %s12_s11 = sadd.s32 1, %s483_s11   ;;  %s560_s9 = smov %s479_s10 }
 0x30d   : > { %p9_p5 = scmp.ge.s32.totalorder %s12_s11, 4   ;;  %s561_s10 = smov %s563_s12 }
 0x30f   :  { %11 = sbr.rel (!%p9_p5) target bundleno = 2 (0x2), region = 61 }

// kernel: finbert_regressor_forward.10
= control target key start
LH: loop header
LB: loop body
LE: loop exit
PB: predicated region body
PF: predicated region fallthrough
CT: control target
= control target key end

     0   :  { %s551_s1 = inlined_call_operand.vmem [shape: bf16[128,384], index: 1, kind: input, shape index: {}]   ;;  %s552_s0 = inlined_call_operand.vmem [shape: bf16[16,128], index: 0, kind: input, shape index: {}]   ;;  %s553_s2 = inlined_call_operand.vmem [shape: f32[1,384], index: 2, kind: input, shape index: {}]   ;;  %s554_s3 = inlined_call_operand.vmem [shape: bf16[16,384], index: 3, kind: output, shape index: {}]  }
   0x1   :  { %v334_v0 = vld [vmem:[%s551_s1 + $0xa8] sm:$0xf]  ;;  %v367_v1 = vld [vmem:[%s551_s1 + $0xb0] sm:$0xf0]  ;;  %v366_v2 = vld [vmem:[%s551_s1 + $0xac] sm:$0xf] }
   0x2   :  { %v335_v3 = vor.u32 %v367_v1, %v334_v0  ;;  %v336_v4 = vld [vmem:[%s551_s1 + $0xb4] sm:$0xf0]  ;;  %v342_v5 = vld [vmem:[%s551_s1 + $0xb0] sm:$0xf]  ;;  %v368_v6 = vld [vmem:[%s551_s1 + $0xb8] sm:$0xf0] }
   0x3   :  { %v339_v7 = vor.u32 %v366_v2, %v336_v4  ;;  %v343_v8 = vor.u32 %v368_v6, %v342_v5  ;;  %v322_v9 = vld [vmem:[%s551_s1 + $0x90] sm:$0xf]  ;;  %v364_v10 = vld [vmem:[%s551_s1 + $0x98] sm:$0xf0]  ;;  %v363_v11 = vld [vmem:[%s551_s1 + $0x94] sm:$0xf] }
   0x4   :  { %190 = vmatpush.bf16.msra.mxu0 %v335_v3  ;;  %v323_v12 = vor.u32 %v364_v10, %v322_v9  ;;  %v324_v13 = vld [vmem:[%s551_s1 + $0x9c] sm:$0xf0]  ;;  %v330_v14 = vld [vmem:[%s551_s1 + $0x98] sm:$0xf]  ;;  %v365_v15 = vld [vmem:[%s551_s1 + $0xa0] sm:$0xf0] }
   0x5   :  { %204 = vmatpush.bf16.msra.mxu1 %v339_v7  ;;  %218 = vmatpush.bf16.msra.mxu2 %v343_v8  ;;  %v327_v16 = vor.u32 %v363_v11, %v324_v13  ;;  %v331_v17 = vor.u32 %v365_v15, %v330_v14  ;;  %v310_v18 = vld [vmem:[%s551_s1 + $0x78] sm:$0xf]  ;;  %v361_v19 = vld [vmem:[%s551_s1 + $0x80] sm:$0xf0]  ;;  %v360_v20 = vld [vmem:[%s551_s1 + $0x7c] sm:$0xf] }
   0x6   :  { %v312_v21 = vld [vmem:[%s551_s1 + $0x84] sm:$0xf0]  ;;  %v318_v22 = vld [vmem:[%s551_s1 + $0x80] sm:$0xf]  ;;  %v362_v23 = vld [vmem:[%s551_s1 + $0x88] sm:$0xf0]  ;;  %v311_v24 = vor.u32 %v361_v19, %v310_v18 }
   0x7   :  { %v315_v25 = vor.u32 %v360_v20, %v312_v21  ;;  %v319_v26 = vor.u32 %v362_v23, %v318_v22  ;;  %v298_v27 = vld [vmem:[%s551_s1 + $0x60] sm:$0xf]  ;;  %v358_v28 = vld [vmem:[%s551_s1 + $0x68] sm:$0xf0]  ;;  %v357_v29 = vld [vmem:[%s551_s1 + $0x64] sm:$0xf] }
   0x8   :  { %191 = vmatpush.bf16.msra.mxu0 %v323_v12  ;;  %v300_v30 = vld [vmem:[%s551_s1 + $0x6c] sm:$0xf0]  ;;  %v306_v31 = vld [vmem:[%s551_s1 + $0x68] sm:$0xf]  ;;  %v359_v32 = vld [vmem:[%s551_s1 + $0x70] sm:$0xf0]  ;;  %v299_v33 = vor.u32 %v358_v28, %v298_v27 }
   0x9   :  { %205 = vmatpush.bf16.msra.mxu1 %v327_v16  ;;  %219 = vmatpush.bf16.msra.mxu2 %v331_v17  ;;  %v303_v34 = vor.u32 %v357_v29, %v300_v30  ;;  %v307_v35 = vor.u32 %v359_v32, %v306_v31  ;;  %v286_v36 = vld [vmem:[%s551_s1 + $0x48] sm:$0xf]  ;;  %v355_v37 = vld [vmem:[%s551_s1 + $0x50] sm:$0xf0]  ;;  %v354_v38 = vld [vmem:[%s551_s1 + $0x4c] sm:$0xf] }
   0xa   :  { %v288_v39 = vld [vmem:[%s551_s1 + $0x54] sm:$0xf0]  ;;  %v294_v40 = vld [vmem:[%s551_s1 + $0x50] sm:$0xf]  ;;  %v356_v41 = vld [vmem:[%s551_s1 + $0x58] sm:$0xf0]  ;;  %v287_v42 = vor.u32 %v355_v37, %v286_v36 }
   0xb   :  { %v291_v43 = vor.u32 %v354_v38, %v288_v39  ;;  %v295_v44 = vor.u32 %v356_v41, %v294_v40  ;;  %v274_v45 = vld [vmem:[%s551_s1 + $0x30] sm:$0xf]  ;;  %v352_v46 = vld [vmem:[%s551_s1 + $0x38] sm:$0xf0]  ;;  %v351_v47 = vld [vmem:[%s551_s1 + $0x34] sm:$0xf] }
   0xc   :  { %192 = vmatpush.bf16.msra.mxu0 %v311_v24  ;;  %v276_v48 = vld [vmem:[%s551_s1 + $0x3c] sm:$0xf0]  ;;  %v282_v49 = vld [vmem:[%s551_s1 + $0x38] sm:$0xf]  ;;  %v353_v50 = vld [vmem:[%s551_s1 + $0x40] sm:$0xf0]  ;;  %v275_v51 = vor.u32 %v352_v46, %v274_v45 }
   0xd   :  { %206 = vmatpush.bf16.msra.mxu1 %v315_v25  ;;  %220 = vmatpush.bf16.msra.mxu2 %v319_v26  ;;  %v279_v52 = vor.u32 %v351_v47, %v276_v48  ;;  %v283_v53 = vor.u32 %v353_v50, %v282_v49  ;;  %v262_v54 = vld [vmem:[%s551_s1 + $0x18] sm:$0xf]  ;;  %v349_v55 = vld [vmem:[%s551_s1 + $0x20] sm:$0xf0]  ;;  %v348_v56 = vld [vmem:[%s551_s1 + $0x1c] sm:$0xf] }
   0xe   :  { %v264_v57 = vld [vmem:[%s551_s1 + $0x24] sm:$0xf0]  ;;  %v270_v58 = vld [vmem:[%s551_s1 + $0x20] sm:$0xf]  ;;  %v350_v59 = vld [vmem:[%s551_s1 + $0x28] sm:$0xf0]  ;;  %v263_v60 = vor.u32 %v349_v55, %v262_v54 }
   0xf   :  { %v267_v61 = vor.u32 %v348_v56, %v264_v57  ;;  %v271_v62 = vor.u32 %v350_v59, %v270_v58  ;;  %v250_v63 = vld [vmem:[%s551_s1] sm:$0xf]  ;;  %v346_v0 = vld [vmem:[%s551_s1 + $0x8] sm:$0xf0]  ;;  %v345_v1 = vld [vmem:[%s551_s1 + $0x4] sm:$0xf] }
  0x10   :  { %193 = vmatpush.bf16.msra.mxu0 %v299_v33  ;;  %v252_v2 = vld [vmem:[%s551_s1 + $0xc] sm:$0xf0]  ;;  %v258_v3 = vld [vmem:[%s551_s1 + $0x8] sm:$0xf]  ;;  %v347_v4 = vld [vmem:[%s551_s1 + $0x10] sm:$0xf0]  ;;  %v251_v5 = vor.u32 %v346_v0, %v250_v63 }
  0x11   :  { %207 = vmatpush.bf16.msra.mxu1 %v303_v34  ;;  %221 = vmatpush.bf16.msra.mxu2 %v307_v35  ;;  %v255_v6 = vor.u32 %v345_v1, %v252_v2  ;;  %v259_v7 = vor.u32 %v347_v4, %v258_v3  ;;  %v344_v8 = vld [vmem:[%s552_s0] sm:$0xff] }
  0x12   :  { %v48_v9 = vld [vmem:[%s553_s2] sm:$0x7] }
  0x13   :  { %v50_v10 = vperm.slane %v48_v9, 0  ;;  %v51_v11 = vperm.slane %v48_v9, 1  ;;  %v52_v17 = vperm.slane %v48_v9, 2 }
  0x14   :  { %194 = vmatpush.bf16.msra.mxu0 %v287_v42 }
  0x15   :  { %208 = vmatpush.bf16.msra.mxu1 %v291_v43  ;;  %222 = vmatpush.bf16.msra.mxu2 %v295_v44 }
  0x18   :  { %195 = vmatpush.bf16.msra.mxu0 %v275_v51 }
  0x19   :  { %209 = vmatpush.bf16.msra.mxu1 %v279_v52  ;;  %223 = vmatpush.bf16.msra.mxu2 %v283_v53 }
  0x1c   :  { %196 = vmatpush.bf16.msra.mxu0 %v263_v60 }
  0x1d   :  { %210 = vmatpush.bf16.msra.mxu1 %v267_v61  ;;  %224 = vmatpush.bf16.msra.mxu2 %v271_v62 }
  0x20   :  { %197 = vmatpush.bf16.msra.mxu0 %v251_v5 }
  0x21   :  { %211 = vmatpush.bf16.msra.mxu1 %v255_v6  ;;  %225 = vmatpush.bf16.msra.mxu2 %v259_v7 }
  0x23   :  { %198 = vmatmul.bf16.vlgmr.msra.gmra.mxu0 %v344_v8 }
  0x24   :  { %212 = vmatmul.bf16.vlgmr.msra.gmra.mxu1 %v344_v8  ;;  %226 = vmatmul.bf16.vlgmr.msra.gmra.mxu2 %v344_v8 }
  0xa0   :  { %v199_v12 = vpop.f32.mrf.mxu0 }
  0xa1   :  { %v200_v13 = vadd.f32 %v199_v12, %v50_v10  ;;  %v213_v14 = vpop.f32.mrf.mxu1 }
  0xa2   :  { %v214_v15 = vadd.f32 %v213_v14, %v51_v11 }
  0xa4   :  { %v232_v16 = vpack.c.bf16 %v214_v15, %v200_v13 }
  0xa6   :  { %236 = vst [vmem:[%s554_s3] sm:$0xff] %v232_v16 }
  0xa7   :  { %v227_v18 = vpop.f32.mrf.mxu2 }
  0xa8   :  { %v228_v19 = vadd.f32 %v227_v18, %v52_v17  ;;  %v201_v20 = vpop.f32.mrf.mxu0 }
  0xa9   :  { %v202_v21 = vadd.f32 %v201_v20, %v50_v10  ;;  %v215_v22 = vpop.f32.mrf.mxu1 }
  0xaa   :  { %v233_v23 = vpack.c.bf16 %v228_v19, %v228_v19  ;;  %v216_v24 = vadd.f32 %v215_v22, %v51_v11 }
  0xac   :  { %237 = vst [vmem:[%s554_s3 + $0x8] sm:$0xf] %v233_v23  ;;  %v234_v25 = vpack.c.bf16 %v216_v24, %v202_v21 }
  0xae   :  { %238 = vst [vmem:[%s554_s3 + $0xc] sm:$0xff] %v234_v25 }
  0xaf   :  { %v229_v26 = vpop.f32.mrf.mxu2 }
  0xb0   :  { %v230_v27 = vadd.f32 %v229_v26, %v52_v17 }
  0xb2   :  { %v235_v28 = vpack.c.bf16 %v230_v27, %v230_v27 }
  0xb4   :  { %239 = vst [vmem:[%s554_s3 + $0x14] sm:$0xf] %v235_v28 }

// kernel: finbert_regressor_forward.12
= control target key start
LH: loop header
LB: loop body
LE: loop exit
PB: predicated region body
PF: predicated region fallthrough
CT: control target
= control target key end

     0   :  { %v250_v19 = vmov 128.0   ;;  %s328_s1 = inlined_call_operand.vmem [shape: bf16[128,128], index: 1, kind: input, shape index: {}]   ;;  %s329_s2 = inlined_call_operand.vmem [shape: f32[1,128], index: 2, kind: input, shape index: {}]   ;;  %s330_s0 = inlined_call_operand.vmem [shape: bf16[16,128], index: 0, kind: input, shape index: {}]   ;;  %s331_s3 = inlined_call_operand.vmem [shape: bf16[16,128], index: 3, kind: input, shape index: {}]   ;;  %s332_s4 = inlined_call_operand.vmem [shape: f32[1,128], index: 4, kind: input, shape index: {}]   ;;  %s333_s5 = inlined_call_operand.vmem [shape: f32[1,128], index: 5, kind: input, shape index: {}]   ;;  %s334_s6 = inlined_call_operand.vmem [shape: bf16[16,128], index: 6, kind: output, shape index: {}]  }
   0x1   :  { %v230_v0 = vld [vmem:[%s328_s1 + $0x38] sm:$0xff]  ;;  %v229_v1 = vld [vmem:[%s328_s1 + $0x30] sm:$0xff]  ;;  %v228_v2 = vld [vmem:[%s328_s1 + $0x28] sm:$0xff]  ;;  %244 = vrcp.f32 %v250_v19 }
   0x2   :  { %99 = vmatpush.bf16.msra.mxu0 %v230_v0  ;;  %v227_v3 = vld [vmem:[%s328_s1 + $0x20] sm:$0xff]  ;;  %v226_v4 = vld [vmem:[%s328_s1 + $0x18] sm:$0xff]  ;;  %v225_v5 = vld [vmem:[%s328_s1 + $0x10] sm:$0xff] }
   0x3   :  { %v224_v6 = vld [vmem:[%s328_s1 + $0x8] sm:$0xff]  ;;  %v223_v7 = vld [vmem:[%s328_s1] sm:$0xff] }
   0x4   :  { %v222_v8 = vld [vmem:[%s330_s0] sm:$0xff] }
   0x5   :  { %v232_v9 = vld [vmem:[%s331_s3] sm:$0xff]  }
   0x6   :  { %100 = vmatpush.bf16.msra.mxu0 %v229_v1  ;;  %v241_v10 = vld [vmem:[%s329_s2] ss:$0 sm:$0xff]  ;;  %v233_v11 = vunpack.c.l.bf16 %v232_v9  ;;  %v234_v15 = vunpack.c.h.bf16 %v232_v9 }
   0x7   :  { %v245_v20 = vpop.eup %244  ;;  %v242_v52 = vld [vmem:[%s332_s4] ss:$0 sm:$0xff] }
   0x8   :  { %v124_v21 = vmul.f32 128.0, %v245_v20  ;;  %vm128_vm0 = vweird.f32 %v245_v20  ;;  %v243_v56 = vld [vmem:[%s333_s5] ss:$0 sm:$0xff] }
   0xa   :  { %101 = vmatpush.bf16.msra.mxu0 %v228_v2  ;;  %v125_v22 = vsub.f32 1.0, %v124_v21 }
   0xc   :  { %v126_v23 = vmul.f32 %v245_v20, %v125_v22 }
   0xe   :  { %102 = vmatpush.bf16.msra.mxu0 %v227_v3  ;;  %v127_v24 = vadd.f32 %v245_v20, %v126_v23 }
  0x10   :  { %v129_v25 = vsel %vm128_vm0, %v245_v20, %v127_v24 }
  0x12   :  { %103 = vmatpush.bf16.msra.mxu0 %v226_v4 }
  0x16   :  { %104 = vmatpush.bf16.msra.mxu0 %v225_v5 }
  0x1a   :  { %105 = vmatpush.bf16.msra.mxu0 %v224_v6 }
  0x1e   :  { %106 = vmatpush.bf16.msra.mxu0 %v223_v7 }
  0x21   :  { %107 = vmatmul.bf16.vlgmr.msra.gmra.mxu0 %v222_v8 }
  0x9e   :  { %v108_v12 = vpop.f32.mrf.mxu0 }
  0x9f   :  { %v109_v13 = vadd.f32 %v241_v10, %v108_v12 }
  0xa1   :  { %v117_v14 = vadd.f32 %v233_v11, %v109_v13 }
  0xa3   :  { %119 = vadd.xlane.f32.xlu0 %v117_v14 }
  0xa6   :  { %v110_v16 = vpop.f32.mrf.mxu0 }
  0xa7   :  { %v111_v17 = vadd.f32 %v241_v10, %v110_v16 }
  0xa9   :  { %v118_v18 = vadd.f32 %v234_v15, %v111_v17 }
  0xab   :  { %121 = vadd.xlane.f32.xlu0 %v118_v18 }
 0x116   :  { %v120_v26 = vpop.xlane.xlu0 %119 }
 0x117   :  { %v130_v27 = vmul.f32 %v129_v25, %v120_v26 }
 0x119   :  { %v132_v28 = vsub.f32 %v117_v14, %v130_v27 }
 0x11b   :  { %v134_v29 = vmul.f32 %v132_v28, %v132_v28 }
 0x11d   :  { %136 = vadd.xlane.f32.xlu1 %v134_v29 }
 0x11e   :  { %v122_v30 = vpop.xlane.xlu0 %121 }
 0x11f   :  { %v131_v31 = vmul.f32 %v129_v25, %v122_v30 }
 0x121   :  { %v133_v32 = vsub.f32 %v118_v18, %v131_v31 }
 0x123   :  { %v135_v33 = vmul.f32 %v133_v32, %v133_v32 }
 0x125   :  { %138 = vadd.xlane.f32.xlu1 %v135_v33 }
 0x190   :  { %v137_v34 = vpop.xlane.xlu1 %136 }
 0x191   :  { %v140_v35 = vmul.f32 %v137_v34, %v129_v25 }
 0x193   :  { %v142_v36 = vadd.f32 1e-12, %v140_v35 }
 0x195   :  { %246 = vrsqrt.f32 %v142_v36  ;;  %vm150_vm2 = vweird.f32 %v142_v36 }
 0x198   :  { %v139_v37 = vpop.xlane.xlu1 %138 }
 0x199   :  { %v141_v38 = vmul.f32 %v139_v37, %v129_v25 }
 0x19b   :  { %v247_v39 = vpop.eup %246  ;;  %v143_v40 = vadd.f32 1e-12, %v141_v38 }
 0x19c   :  { %v145_v41 = vmul.f32 %v247_v39, %v142_v36  ;;  %vm151_vm1 = vweird.f32 %v247_v39 }
 0x19d   :  { %248 = vrsqrt.f32 %v143_v40  ;;  %vm152_vm3 = vmor %vm150_vm2, %vm151_vm1  ;;  %vm160_vm5 = vweird.f32 %v143_v40 }
 0x19e   :  { %v146_v42 = vmul.f32 %v247_v39, %v145_v41 }
 0x1a0   :  { %v147_v43 = vmul.f32 0.5, %v146_v42 }
 0x1a2   :  { %v148_v44 = vsub.f32 1.5, %v147_v43 }
 0x1a3   :  { %v249_v45 = vpop.eup %248 }
 0x1a4   :  { %v149_v46 = vmul.f32 %v247_v39, %v148_v44  ;;  %v155_v47 = vmul.f32 %v249_v45, %v143_v40  ;;  %vm161_vm4 = vweird.f32 %v249_v45 }
 0x1a5   :  { %vm162_vm6 = vmor %vm160_vm5, %vm161_vm4 }
 0x1a6   :  { %v156_v48 = vmul.f32 %v249_v45, %v155_v47  ;;  %v153_v49 = vsel %vm152_vm3, %v247_v39, %v149_v46 }
 0x1a7   :  { %v164_v53 = vmul.f32 %v153_v49, %v132_v28 }
 0x1a8   :  { %v157_v50 = vmul.f32 0.5, %v156_v48 }
 0x1a9   :  { %v170_v57 = vmul.f32 %v242_v52, %v164_v53 }
 0x1aa   :  { %v158_v51 = vsub.f32 1.5, %v157_v50 }
 0x1ab   :  { %v176_v60 = vadd.f32 %v243_v56, %v170_v57 }
 0x1ac   :  { %v159_v54 = vmul.f32 %v249_v45, %v158_v51 }
 0x1ae   :  { %v163_v55 = vsel %vm162_vm6, %v249_v45, %v159_v54 }
 0x1af   :  { %v165_v58 = vmul.f32 %v163_v55, %v133_v32 }
 0x1b1   :  { %v171_v59 = vmul.f32 %v242_v52, %v165_v58 }
 0x1b3   :  { %v177_v61 = vadd.f32 %v243_v56, %v171_v59 }
 0x1b5   :  { %v238_v62 = vpack.c.bf16 %v177_v61, %v176_v60 }
 0x1b7   :  { %239 = vst [vmem:[%s334_s6] sm:$0xff] %v238_v62  }

// kernel: finbert_regressor_forward.13
= control target key start
LH: loop header
LB: loop body
LE: loop exit
PB: predicated region body
PF: predicated region fallthrough
CT: control target
= control target key end

     0   :  { %s1072_s1 = inlined_call_operand.vmem [shape: bf16[128,256], index: 1, kind: input, shape index: {}]   ;;  %s1073_s0 = inlined_call_operand.vmem [shape: bf16[16,128], index: 0, kind: input, shape index: {}, may-alias: {0,5}]   ;;  %s1074_s2 = inlined_call_operand.vmem [shape: f32[1,256], index: 2, kind: input, shape index: {}]   ;;  %s1075_s3 = inlined_call_operand.vmem [shape: bf16[256,128], index: 3, kind: input, shape index: {}]   ;;  %s1076_s4 = inlined_call_operand.vmem [shape: f32[1,128], index: 4, kind: input, shape index: {}]   ;;  %s1077_s5 = inlined_call_operand.vmem [shape: bf16[16,128], index: 5, kind: input, shape index: {}, may-alias: {0,5}]   ;;  %s1078_s6 = inlined_call_operand.vmem [shape: f32[1,128], index: 6, kind: input, shape index: {}]   ;;  %s1079_s7 = inlined_call_operand.vmem [shape: f32[1,128], index: 7, kind: input, shape index: {}]   ;;  %s1080_s8 = inlined_call_operand.vmem [shape: bf16[16,128], index: 8, kind: output, shape index: {}]  }
   0x1   :  { %v643_v0 = vld [vmem:[%s1072_s1 + $0x70] sm:$0xf]  ;;  %v729_v1 = vld [vmem:[%s1072_s1 + $0x74] sm:$0xf0]  ;;  %v728_v2 = vld [vmem:[%s1072_s1 + $0x74] sm:$0xf] }
   0x2   :  { %v644_v3 = vor.u32 %v729_v1, %v643_v0  ;;  %v645_v4 = vld [vmem:[%s1072_s1 + $0x78] sm:$0xf0]  ;;  %v635_v5 = vld [vmem:[%s1072_s1 + $0x60] sm:$0xf]  ;;  %v727_v6 = vld [vmem:[%s1072_s1 + $0x64] sm:$0xf0] }
   0x3   :  { %v648_v7 = vor.u32 %v728_v2, %v645_v4  ;;  %v726_v8 = vld [vmem:[%s1072_s1 + $0x64] sm:$0xf]  ;;  %v637_v9 = vld [vmem:[%s1072_s1 + $0x68] sm:$0xf0]  ;;  %v636_v10 = vor.u32 %v727_v6, %v635_v5  ;;  %v627_v12 = vld [vmem:[%s1072_s1 + $0x50] sm:$0xf] }
   0x4   :  { %145 = vmatpush.bf16.msra.mxu0 %v644_v3  ;;  %v640_v11 = vor.u32 %v726_v8, %v637_v9  ;;  %v725_v13 = vld [vmem:[%s1072_s1 + $0x54] sm:$0xf0]  ;;  %v724_v14 = vld [vmem:[%s1072_s1 + $0x54] sm:$0xf]  ;;  %v629_v15 = vld [vmem:[%s1072_s1 + $0x58] sm:$0xf0] }
   0x5   :  { %159 = vmatpush.bf16.msra.mxu1 %v648_v7  ;;  %v628_v16 = vor.u32 %v725_v13, %v627_v12  ;;  %v632_v17 = vor.u32 %v724_v14, %v629_v15  ;;  %v619_v18 = vld [vmem:[%s1072_s1 + $0x40] sm:$0xf]  ;;  %v723_v19 = vld [vmem:[%s1072_s1 + $0x44] sm:$0xf0]  ;;  %v722_v20 = vld [vmem:[%s1072_s1 + $0x44] sm:$0xf] }
   0x6   :  { %v621_v21 = vld [vmem:[%s1072_s1 + $0x48] sm:$0xf0]  ;;  %v620_v22 = vor.u32 %v723_v19, %v619_v18  ;;  %v611_v24 = vld [vmem:[%s1072_s1 + $0x30] sm:$0xf]  ;;  %v721_v25 = vld [vmem:[%s1072_s1 + $0x34] sm:$0xf0] }
   0x7   :  { %v624_v23 = vor.u32 %v722_v20, %v621_v21  ;;  %v720_v26 = vld [vmem:[%s1072_s1 + $0x34] sm:$0xf]  ;;  %v613_v27 = vld [vmem:[%s1072_s1 + $0x38] sm:$0xf0]  ;;  %v612_v28 = vor.u32 %v721_v25, %v611_v24  ;;  %v603_v30 = vld [vmem:[%s1072_s1 + $0x20] sm:$0xf] }
   0x8   :  { %146 = vmatpush.bf16.msra.mxu0 %v636_v10  ;;  %v616_v29 = vor.u32 %v720_v26, %v613_v27  ;;  %v719_v31 = vld [vmem:[%s1072_s1 + $0x24] sm:$0xf0]  ;;  %v718_v32 = vld [vmem:[%s1072_s1 + $0x24] sm:$0xf]  ;;  %v605_v33 = vld [vmem:[%s1072_s1 + $0x28] sm:$0xf0] }
   0x9   :  { %160 = vmatpush.bf16.msra.mxu1 %v640_v11  ;;  %v604_v34 = vor.u32 %v719_v31, %v603_v30  ;;  %v608_v35 = vor.u32 %v718_v32, %v605_v33  ;;  %v595_v36 = vld [vmem:[%s1072_s1 + $0x10] sm:$0xf]  ;;  %v717_v37 = vld [vmem:[%s1072_s1 + $0x14] sm:$0xf0]  ;;  %v716_v38 = vld [vmem:[%s1072_s1 + $0x14] sm:$0xf] }
   0xa   :  { %v597_v39 = vld [vmem:[%s1072_s1 + $0x18] sm:$0xf0]  ;;  %v596_v40 = vor.u32 %v717_v37, %v595_v36  ;;  %v587_v42 = vld [vmem:[%s1072_s1] sm:$0xf]  ;;  %v715_v43 = vld [vmem:[%s1072_s1 + $0x4] sm:$0xf0] }
   0xb   :  { %v600_v41 = vor.u32 %v716_v38, %v597_v39  ;;  %v714_v44 = vld [vmem:[%s1072_s1 + $0x4] sm:$0xf]  ;;  %v589_v45 = vld [vmem:[%s1072_s1 + $0x8] sm:$0xf0]  ;;  %v588_v46 = vor.u32 %v715_v43, %v587_v42  ;;  %v53_v49 = vld [vmem:[%s1074_s2] sm:$0x3] }
   0xc   :  { %147 = vmatpush.bf16.msra.mxu0 %v628_v16  ;;  %v592_v47 = vor.u32 %v714_v44, %v589_v45  ;;  %v713_v48 = vld [vmem:[%s1073_s0] sm:$0xff]  ;;  %v55_v50 = vperm.slane %v53_v49, 0  ;;  %v56_v51 = vperm.slane %v53_v49, 1  ;;  %v737_v53 = vld [vmem:[%s1075_s3 + $0x38] sm:$0xff]  ;;  %v736_v58 = vld [vmem:[%s1075_s3 + $0x30] sm:$0xff] }
   0xd   :  { %161 = vmatpush.bf16.msra.mxu1 %v632_v17  ;;  %v745_v54 = vld [vmem:[%s1075_s3 + $0x78] sm:$0xff]  ;;  %465 = vmatpush.bf16.msra.mxu2 %v737_v53  ;;  %v744_v59 = vld [vmem:[%s1075_s3 + $0x70] sm:$0xff]  ;;  %v735_v0 = vld [vmem:[%s1075_s3 + $0x28] sm:$0xff] }
   0xe   :  { %479 = vmatpush.bf16.msra.mxu3 %v745_v54  ;;  %v743_v1 = vld [vmem:[%s1075_s3 + $0x68] sm:$0xff]  ;;  %v734_v10 = vld [vmem:[%s1075_s3 + $0x20] sm:$0xff]  ;;  %v733_v15 = vld [vmem:[%s1075_s3 + $0x18] sm:$0xff] }
   0xf   :  { %v742_v11 = vld [vmem:[%s1075_s3 + $0x60] sm:$0xff]  ;;  %v741_v16 = vld [vmem:[%s1075_s3 + $0x58] sm:$0xff]  ;;  %v732_v24 = vld [vmem:[%s1075_s3 + $0x10] sm:$0xff] }
  0x10   :  { %148 = vmatpush.bf16.msra.mxu0 %v620_v22  ;;  %v740_v25 = vld [vmem:[%s1075_s3 + $0x50] sm:$0xff] }
  0x11   :  { %162 = vmatpush.bf16.msra.mxu1 %v624_v23  ;;  %466 = vmatpush.bf16.msra.mxu2 %v736_v58 }
  0x12   :  { %480 = vmatpush.bf16.msra.mxu3 %v744_v59 }
  0x14   :  { %149 = vmatpush.bf16.msra.mxu0 %v612_v28 }
  0x15   :  { %163 = vmatpush.bf16.msra.mxu1 %v616_v29  ;;  %467 = vmatpush.bf16.msra.mxu2 %v735_v0 }
  0x16   :  { %481 = vmatpush.bf16.msra.mxu3 %v743_v1 }
  0x18   :  { %150 = vmatpush.bf16.msra.mxu0 %v604_v34  ;;  %v731_v34 = vld [vmem:[%s1075_s3 + $0x8] sm:$0xff] }
  0x19   :  { %164 = vmatpush.bf16.msra.mxu1 %v608_v35  ;;  %468 = vmatpush.bf16.msra.mxu2 %v734_v10  ;;  %v739_v35 = vld [vmem:[%s1075_s3 + $0x48] sm:$0xff] }
  0x1a   :  { %482 = vmatpush.bf16.msra.mxu3 %v742_v11 }
  0x1c   :  { %151 = vmatpush.bf16.msra.mxu0 %v596_v40 }
  0x1d   :  { %165 = vmatpush.bf16.msra.mxu1 %v600_v41  ;;  %469 = vmatpush.bf16.msra.mxu2 %v733_v15 }
  0x1e   :  { %483 = vmatpush.bf16.msra.mxu3 %v741_v16 }
  0x20   :  { %152 = vmatpush.bf16.msra.mxu0 %v588_v46  ;;  %v730_v46 = vld [vmem:[%s1075_s3] sm:$0xff] }
  0x21   :  { %166 = vmatpush.bf16.msra.mxu1 %v592_v47  ;;  %470 = vmatpush.bf16.msra.mxu2 %v732_v24  ;;  %v738_v47 = vld [vmem:[%s1075_s3 + $0x40] sm:$0xff] }
  0x22   :  { %484 = vmatpush.bf16.msra.mxu3 %v740_v25 }
  0x23   :  { %153 = vmatmul.bf16.vlgmr.msra.gmra.mxu0 %v713_v48 }
  0x24   :  { %167 = vmatmul.bf16.vlgmr.msra.gmra.mxu1 %v713_v48 }
  0x25   :  { %471 = vmatpush.bf16.msra.mxu2 %v731_v34 }
  0x26   :  { %485 = vmatpush.bf16.msra.mxu3 %v739_v35 }
  0x29   :  { %472 = vmatpush.bf16.msra.mxu2 %v730_v46 }
  0x2a   :  { %486 = vmatpush.bf16.msra.mxu3 %v738_v47 }
  0xa0   :  { %v154_v52 = vpop.f32.mrf.mxu0 }
  0xa1   :  { %v937_v55 = vadd.f32 %v154_v52, %v55_v50  ;;  %v168_v56 = vpop.f32.mrf.mxu1 }
  0xa2   :  { %v939_v57 = vadd.f32 %v168_v56, %v56_v51 }
  0xa3   :  { %v948_v60 = vmul.f32 0.70710677, %v937_v55 }
  0xa4   :  { %v951_v61 = vmul.f32 0.70710677, %v939_v57 }
  0xa5   :  { %v189_v62 = vand.u32 2147483647, %v948_v60 }
  0xa6   :  { %v190_v63 = vand.u32 2147483647, %v951_v61 }
  0xa7   :  { %v193_v2 = vmul.f32 0.3275911, %v189_v62  ;;  %v297_v29 = vsub.f32 0.0, %v189_v62 }
  0xa8   :  { %v194_v3 = vmul.f32 0.3275911, %v190_v63  ;;  %v156_v4 = vpop.f32.mrf.mxu0  ;;  %v298_v31 = vsub.f32 0.0, %v190_v63 }
  0xa9   :  { %v961_v5 = vadd.f32 1.0, %v193_v2  ;;  %v963_v6 = vadd.f32 %v156_v4, %v55_v50  ;;  %v170_v7 = vpop.f32.mrf.mxu1  ;;  %v301_v40 = vmul.f32 %v297_v29, %v189_v62 }
  0xaa   :  { %v965_v8 = vadd.f32 1.0, %v194_v3  ;;  %v967_v9 = vadd.f32 %v170_v7, %v56_v51  ;;  %v302_v42 = vmul.f32 %v298_v31, %v190_v63 }
  0xab   :  { %760 = vrcp.f32 %v961_v5  ;;  %v978_v12 = vmul.f32 0.70710677, %v963_v6  ;;  %v212_v32 = vand.u32 2147483648, %v961_v5  ;;  %v210_v36 = vand.u32 2147483647, %v961_v5 }
  0xac   :  { %762 = vrcp.f32 %v965_v8  ;;  %v981_v13 = vmul.f32 0.70710677, %v967_v9  ;;  %v227_v37 = vand.u32 2147483648, %v965_v8  ;;  %v225_v39 = vand.u32 2147483647, %v965_v8 }
  0xad   :  { %v984_v14 = vand.u32 2147483647, %v978_v12  ;;  %vm206_vm2 = vweird.f32 %v961_v5  ;;  %vm221_vm3 = vweird.f32 %v965_v8  ;;  %v213_v43 = vor.u32 1.1754944e-38, %v212_v32 }
  0xae   :  { %v993_v17 = vand.u32 2147483647, %v981_v13  ;;  %vm211_vm5 = vcmp.eq.f32.partialorder %v210_v36, 8.507059e+37  ;;  %v228_v49 = vor.u32 1.1754944e-38, %v227_v37  ;;  %vm226_vm7 = vcmp.eq.f32.partialorder %v225_v39, 8.507059e+37 }
  0xaf   :  { %v195_v18 = vmul.f32 0.3275911, %v984_v14  ;;  %v305_v54 = vmul.f32 1.442695, %v301_v40  ;;  %v307_v62 = vmul.f32 1.442695, %v302_v42 }
  0xb0   :  { %v196_v20 = vmul.f32 0.3275911, %v993_v17  ;;  %v299_v16 = vsub.f32 0.0, %v984_v14 }
  0xb1   :  { %v761_v19 = vpop.eup %760  ;;  %v998_v23 = vadd.f32 1.0, %v195_v18 }
  0xb2   :  { %v763_v21 = vpop.eup %762  ;;  %v202_v22 = vmul.f32 %v761_v19, %v961_v5  ;;  %v1007_v27 = vadd.f32 1.0, %v196_v20  ;;  %vm207_vm0 = vweird.f32 %v761_v19  ;;  %v303_v37 = vmul.f32 %v299_v16, %v984_v14 }
  0xb3   :  { %v217_v26 = vmul.f32 %v763_v21, %v965_v8  ;;  %764 = vrcp.f32 %v998_v23  ;;  %vm222_vm1 = vweird.f32 %v763_v21  ;;  %vm208_vm4 = vmor %vm206_vm2, %vm207_vm0  ;;  %v240_v2 = vand.u32 2147483647, %v998_v23 }
  0xb4   :  { %v203_v28 = vsub.f32 1.0, %v202_v22  ;;  %766 = vrcp.f32 %v1007_v27  ;;  %vm223_vm6 = vmor %vm221_vm3, %vm222_vm1  ;;  %v242_v3 = vand.u32 2147483648, %v998_v23  ;;  %v257_v7 = vand.u32 2147483648, %v1007_v27 }
  0xb5   :  { %v218_v30 = vsub.f32 1.0, %v217_v26  ;;  %v255_v15 = vand.u32 2147483647, %v1007_v27  ;;  %vm236_vm10 = vweird.f32 %v998_v23  ;;  %vm251_vm11 = vweird.f32 %v1007_v27 }
  0xb6   :  { %v204_v33 = vmul.f32 %v761_v19, %v203_v28  ;;  %v243_v20 = vor.u32 1.1754944e-38, %v242_v3  ;;  %vm241_vm13 = vcmp.eq.f32.partialorder %v240_v2, 8.507059e+37  ;;  %v258_v25 = vor.u32 1.1754944e-38, %v257_v7 }
  0xb7   :  { %v219_v38 = vmul.f32 %v763_v21, %v218_v30  ;;  %vm256_vm15 = vcmp.eq.f32.partialorder %v255_v15, 8.507059e+37  ;;  %768 = vpow2.f32 %v305_v54  ;;  %v309_v47 = vmul.f32 1.442695, %v303_v37 }
  0xb8   :  { %v205_v41 = vadd.f32 %v761_v19, %v204_v33  ;;  %770 = vpow2.f32 %v307_v62  ;;  %vm181_vm0 = vcmp.ge.f32.partialorder %v948_v60, 0.0  ;;  %vm182_vm1 = vcmp.ge.f32.partialorder %v951_v61, 0.0 }
  0xb9   :  { %v220_v44 = vadd.f32 %v763_v21, %v219_v38  ;;  %v765_v45 = vpop.eup %764  ;;  %772 = vpow2.f32 %v309_v47  ;;  %v782_v7 = vmov -1.0   ;;  %vm183_vm2 = vcmp.ge.f32.partialorder %v978_v12, 0.0 }
  0xba   :  { %v209_v48 = vsel %vm208_vm4, %v761_v19, %v205_v41  ;;  %v767_v50 = vpop.eup %766  ;;  %v232_v51 = vmul.f32 %v765_v45, %v998_v23  ;;  %vm237_vm8 = vweird.f32 %v765_v45  ;;  %v300_v23 = vsub.f32 0.0, %v993_v17 }
  0xbb   :  { %v1031_v52 = vsel %vm211_vm5, %v213_v43, %v209_v48  ;;  %v224_v53 = vsel %vm223_vm6, %v763_v21, %v220_v44  ;;  %v247_v56 = vmul.f32 %v767_v50, %v1007_v27  ;;  %vm252_vm9 = vweird.f32 %v767_v50  ;;  %vm238_vm12 = vmor %vm236_vm10, %vm237_vm8 }
  0xbc   :  { %v261_v58 = vmul.f32 1.0614054, %v1031_v52  ;;  %v229_v59 = vsel %vm226_vm7, %v228_v49, %v224_v53  ;;  %v233_v63 = vsub.f32 1.0, %v232_v51  ;;  %vm253_vm14 = vmor %vm251_vm11, %vm252_vm9  ;;  %v304_v40 = vmul.f32 %v300_v23, %v993_v17 }
  0xbd   :  { %v262_v0 = vmul.f32 1.0614054, %v229_v59  ;;  %v248_v1 = vsub.f32 1.0, %v247_v56  ;;  %v769_v14 = vpop.eup %768  ;;  %v186_v15 = vsel %vm182_vm1, 1.0, %v782_v7  ;;  %vm184_vm3 = vcmp.ge.f32.partialorder %v981_v13, 0.0 }
  0xbe   :  { %v265_v4 = vadd.f32 -1.4531521, %v261_v58  ;;  %v234_v5 = vmul.f32 %v765_v45, %v233_v63  ;;  %v771_v56 = vpop.eup %770  ;;  %v174_v12 = vmul.f32 0.5, %v939_v57  ;;  %v757_v57 = vld [vmem:[%s1076_s4] ss:$0 sm:$0xff]  ;;  %v783_v47 = vmov 128.0  }
  0xbf   :  { %v266_v8 = vadd.f32 -1.4531521, %v262_v0  ;;  %v249_v10 = vmul.f32 %v767_v50, %v248_v1 }
  0xc0   :  { %v269_v11 = vmul.f32 %v265_v4, %v1031_v52  ;;  %v235_v18 = vadd.f32 %v765_v45, %v234_v5  ;;  %v773_v5 = vpop.eup %772 }
  0xc1   :  { %v270_v19 = vmul.f32 %v266_v8, %v229_v59  ;;  %v250_v22 = vadd.f32 %v767_v50, %v249_v10  ;;  %v185_v8 = vsel %vm181_vm0, 1.0, %v782_v7 }
  0xc2   :  { %v273_v21 = vadd.f32 1.4214138, %v269_v11  ;;  %v239_v24 = vsel %vm238_vm12, %v765_v45, %v235_v18 }
  0xc3   :  { %v274_v26 = vadd.f32 1.4214138, %v270_v19  ;;  %v244_v28 = vsel %vm241_vm13, %v243_v20, %v239_v24  ;;  %v254_v30 = vsel %vm253_vm14, %v767_v50, %v250_v22  ;;  %v311_v50 = vmul.f32 1.442695, %v304_v40 }
  0xc4   :  { %v277_v29 = vmul.f32 %v273_v21, %v1031_v52  ;;  %v263_v31 = vmul.f32 1.0614054, %v244_v28  ;;  %v259_v32 = vsel %vm256_vm15, %v258_v25, %v254_v30  ;;  %v187_v21 = vsel %vm183_vm2, 1.0, %v782_v7 }
  0xc5   :  { %v278_v33 = vmul.f32 %v274_v26, %v229_v59  ;;  %v264_v34 = vmul.f32 1.0614054, %v259_v32  ;;  %774 = vpow2.f32 %v311_v50  ;;  %v188_v22 = vsel %vm184_vm3, 1.0, %v782_v7 }
  0xc6   :  { %v281_v27 = vadd.f32 -0.28449672, %v277_v29  ;;  %v267_v35 = vadd.f32 -1.4531521, %v263_v31  ;;  %v173_v29 = vmul.f32 0.5, %v937_v55  ;;  %v175_v30 = vmul.f32 0.5, %v963_v6 }
  0xc7   :  { %v282_v36 = vadd.f32 -0.28449672, %v278_v33  ;;  %v268_v39 = vadd.f32 -1.4531521, %v264_v34  ;;  %v176_v31 = vmul.f32 0.5, %v967_v9  ;;  %v747_v55 = vld [vmem:[%s1077_s5] sm:$0xff]   ;;  %776 = vrcp.f32 %v783_v47 }
  0xc8   :  { %v285_v38 = vmul.f32 %v281_v27, %v1031_v52  ;;  %v271_v41 = vmul.f32 %v267_v35, %v244_v28 }
  0xc9   :  { %v286_v42 = vmul.f32 %v282_v36, %v229_v59  ;;  %v272_v44 = vmul.f32 %v268_v39, %v259_v32 }
  0xca   :  { %v289_v43 = vadd.f32 0.2548296, %v285_v38  ;;  %v275_v45 = vadd.f32 1.4214138, %v271_v41  ;;  %v748_v38 = vunpack.c.l.bf16 %v747_v55 }
  0xcb   :  { %v290_v46 = vadd.f32 0.2548296, %v286_v42  ;;  %v276_v49 = vadd.f32 1.4214138, %v272_v44  ;;  %v775_v11 = vpop.eup %774  ;;  %v749_v44 = vunpack.c.h.bf16 %v747_v55 }
  0xcc   :  { %v293_v48 = vmul.f32 %v289_v43, %v1031_v52  ;;  %v279_v51 = vmul.f32 %v275_v45, %v244_v28 }
  0xcd   :  { %v294_v53 = vmul.f32 %v290_v46, %v229_v59  ;;  %v280_v54 = vmul.f32 %v276_v49, %v259_v32 }
  0xce   :  { %v283_v58 = vadd.f32 -0.28449672, %v279_v51  ;;  %v313_v62 = vmul.f32 %v769_v14, %v293_v48  ;;  %v777_v48 = vpop.eup %776 }
  0xcf   :  { %v284_v17 = vadd.f32 -0.28449672, %v280_v54  ;;  %v314_v63 = vmul.f32 %v771_v56, %v294_v53  ;;  %v519_v49 = vmul.f32 128.0, %v777_v48  ;;  %vm523_vm4 = vweird.f32 %v777_v48 }
  0xd0   :  { %v287_v0 = vmul.f32 %v283_v58, %v244_v28  ;;  %v317_v3 = vsub.f32 1.0, %v313_v62 }
  0xd1   :  { %v288_v1 = vmul.f32 %v284_v17, %v259_v32  ;;  %v318_v4 = vsub.f32 1.0, %v314_v63  ;;  %v520_v50 = vsub.f32 1.0, %v519_v49 }
  0xd2   :  { %v291_v2 = vadd.f32 0.2548296, %v287_v0  ;;  %v321_v18 = vmul.f32 %v317_v3, %v185_v8 }
  0xd3   :  { %v292_v52 = vadd.f32 0.2548296, %v288_v1  ;;  %v322_v19 = vmul.f32 %v318_v4, %v186_v15  ;;  %v521_v51 = vmul.f32 %v777_v48, %v520_v50 }
  0xd4   :  { %v295_v59 = vmul.f32 %v291_v2, %v244_v28  ;;  %v325_v25 = vadd.f32 1.0, %v321_v18 }
  0xd5   :  { %v296_v10 = vmul.f32 %v292_v52, %v259_v32  ;;  %v326_v28 = vadd.f32 1.0, %v322_v19  ;;  %v522_v53 = vadd.f32 %v777_v48, %v521_v51 }
  0xd6   :  { %v315_v16 = vmul.f32 %v773_v5, %v295_v59  ;;  %v329_v32 = vmul.f32 %v325_v25, %v173_v29 }
  0xd7   :  { %v316_v60 = vmul.f32 %v775_v11, %v296_v10  ;;  %v330_v27 = vmul.f32 %v326_v28, %v174_v12  ;;  %v524_v14 = vsel %vm523_vm4, %v777_v48, %v522_v53  ;;  %v759_v28 = vld [vmem:[%s1079_s7] ss:$0 sm:$0xff] }
  0xd8   :  { %v319_v20 = vsub.f32 1.0, %v315_v16 }
  0xd9   :  { %v320_v61 = vsub.f32 1.0, %v316_v60 }
  0xda   :  { %v323_v24 = vmul.f32 %v319_v20, %v187_v21 }
  0xdb   :  { %v324_v26 = vmul.f32 %v320_v61, %v188_v22  ;;  %v758_v22 = vld [vmem:[%s1078_s6] ss:$0 sm:$0xff] }
  0xdc   :  { %v327_v23 = vadd.f32 1.0, %v323_v24 }
  0xdd   :  { %v328_v13 = vadd.f32 1.0, %v324_v26 }
  0xde   :  { %v331_v33 = vmul.f32 %v327_v23, %v175_v30 }
  0xdf   :  { %v332_v34 = vmul.f32 %v328_v13, %v176_v31 }
  0xe0   :  { %v335_v35 = vpack.c.bf16 %v331_v33, %v329_v32 }
  0xe1   :  { %v336_v36 = vpack.c.bf16 %v332_v34, %v330_v27 }
  0xe2   :  { %473 = vmatmul.bf16.vlgmr.msra.gmra.mxu2 %v335_v35 }
  0xe3   :  { %487 = vmatmul.bf16.vlgmr.msra.gmra.mxu3 %v336_v36 }
 0x165   :  { %v474_v37 = vpop.f32.mrf.mxu2 }
 0x166   :  { %v488_v6 = vpop.f32.mrf.mxu3 }
 0x167   :  { %v489_v9 = vadd.f32 %v488_v6, %v474_v37 }
 0x169   :  { %v506_v39 = vadd.f32 %v757_v57, %v489_v9 }
 0x16b   :  { %v512_v40 = vadd.f32 %v748_v38, %v506_v39 }
 0x16d   :  { %514 = vadd.xlane.f32.xlu0 %v512_v40  ;;  %v476_v41 = vpop.f32.mrf.mxu2 }
 0x16e   :  { %v490_v42 = vpop.f32.mrf.mxu3 }
 0x16f   :  { %v491_v43 = vadd.f32 %v490_v42, %v476_v41 }
 0x171   :  { %v507_v45 = vadd.f32 %v757_v57, %v491_v43 }
 0x173   :  { %v513_v46 = vadd.f32 %v749_v44, %v507_v45 }
 0x175   :  { %516 = vadd.xlane.f32.xlu0 %v513_v46 }
 0x1e0   :  { %v515_v54 = vpop.xlane.xlu0 %514 }
 0x1e1   :  { %v525_v56 = vmul.f32 %v524_v14, %v515_v54 }
 0x1e3   :  { %v527_v58 = vsub.f32 %v512_v40, %v525_v56 }
 0x1e5   :  { %v529_v62 = vmul.f32 %v527_v58, %v527_v58 }
 0x1e7   :  { %531 = vadd.xlane.f32.xlu1 %v529_v62 }
 0x1e8   :  { %v517_v17 = vpop.xlane.xlu0 %516 }
 0x1e9   :  { %v526_v63 = vmul.f32 %v524_v14, %v517_v17 }
 0x1eb   :  { %v528_v0 = vsub.f32 %v513_v46, %v526_v63 }
 0x1ed   :  { %v530_v1 = vmul.f32 %v528_v0, %v528_v0 }
 0x1ef   :  { %533 = vadd.xlane.f32.xlu1 %v530_v1 }
 0x25a   :  { %v532_v2 = vpop.xlane.xlu1 %531 }
 0x25b   :  { %v535_v3 = vmul.f32 %v532_v2, %v524_v14 }
 0x25d   :  { %v537_v52 = vadd.f32 1e-12, %v535_v3 }
 0x25f   :  { %778 = vrsqrt.f32 %v537_v52  ;;  %vm545_vm6 = vweird.f32 %v537_v52 }
 0x262   :  { %v534_v4 = vpop.xlane.xlu1 %533 }
 0x263   :  { %v536_v59 = vmul.f32 %v534_v4, %v524_v14 }
 0x265   :  { %v779_v5 = vpop.eup %778  ;;  %v538_v7 = vadd.f32 1e-12, %v536_v59 }
 0x266   :  { %v540_v8 = vmul.f32 %v779_v5, %v537_v52  ;;  %vm546_vm5 = vweird.f32 %v779_v5 }
 0x267   :  { %780 = vrsqrt.f32 %v538_v7  ;;  %vm547_vm7 = vmor %vm545_vm6, %vm546_vm5  ;;  %vm555_vm9 = vweird.f32 %v538_v7 }
 0x268   :  { %v541_v10 = vmul.f32 %v779_v5, %v540_v8 }
 0x26a   :  { %v542_v11 = vmul.f32 0.5, %v541_v10 }
 0x26c   :  { %v543_v15 = vsub.f32 1.5, %v542_v11 }
 0x26d   :  { %v781_v16 = vpop.eup %780 }
 0x26e   :  { %v544_v18 = vmul.f32 %v779_v5, %v543_v15  ;;  %v550_v60 = vmul.f32 %v781_v16, %v538_v7  ;;  %vm556_vm8 = vweird.f32 %v781_v16 }
 0x26f   :  { %vm557_vm10 = vmor %vm555_vm9, %vm556_vm8 }
 0x270   :  { %v551_v19 = vmul.f32 %v781_v16, %v550_v60  ;;  %v548_v20 = vsel %vm547_vm7, %v779_v5, %v544_v18 }
 0x271   :  { %v559_v24 = vmul.f32 %v548_v20, %v527_v58 }
 0x272   :  { %v552_v21 = vmul.f32 0.5, %v551_v19 }
 0x273   :  { %v565_v29 = vmul.f32 %v758_v22, %v559_v24 }
 0x274   :  { %v553_v61 = vsub.f32 1.5, %v552_v21 }
 0x275   :  { %v571_v12 = vadd.f32 %v759_v28, %v565_v29 }
 0x276   :  { %v554_v25 = vmul.f32 %v781_v16, %v553_v61 }
 0x278   :  { %v558_v26 = vsel %vm557_vm10, %v781_v16, %v554_v25 }
 0x279   :  { %v560_v30 = vmul.f32 %v558_v26, %v528_v0 }
 0x27b   :  { %v566_v23 = vmul.f32 %v758_v22, %v560_v30 }
 0x27d   :  { %v572_v31 = vadd.f32 %v759_v28, %v566_v23 }
 0x27f   :  { %v753_v13 = vpack.c.bf16 %v572_v31, %v571_v12 }
 0x281   :  { %754 = vst [vmem:[%s1080_s8] sm:$0xff] %v753_v13  }

</bundles_post_ra>
